<compile_context>
chip_gen: v7x
topology: tpu7x:2x2x1
jax: 0.10.0
libtpu: 0.0.40
codegen_flags: <defaults>
</compile_context>

<pallas_src>
import functools

import jax
import jax.numpy as jnp
from jax.experimental import pallas as pl
from jax.experimental.pallas import tpu as pltpu

_LANE = 128
_SUBLANE = 8


def _round_up(n, m):
    return ((n + m - 1) // m) * m


def _pad2d(a, rows, cols):
    r, c = a.shape
    return jnp.pad(a, ((0, rows - r), (0, cols - c)))


# ---------------------------------------------------------------------------
# Fused Pallas kernel: whole VAE forward for one batch tile.
# refs = (x, eps, enc(w,b)*n_enc, head_w, head_b, dec(w,b)*n_dec,
#         heads_out, z_out, x_mean_out)
# ---------------------------------------------------------------------------
def _fused_vae_kernel(n_enc, n_dec, *refs):
    it = iter(refs)
    x_ref = next(it)
    eps_ref = next(it)
    enc = [(next(it), next(it)) for _ in range(n_enc)]
    head_w_ref = next(it)
    head_b_ref = next(it)
    dec = [(next(it), next(it)) for _ in range(n_dec)]
    heads_ref = next(it)
    z_ref = next(it)
    xmean_ref = next(it)

    def linear(a, w_ref, b_ref):
        # bf16 MXU matmul, fp32 accumulation; bias add stays fp32 (v5e-safe).
        acc = jnp.dot(a.astype(w_ref.dtype), w_ref[...],
                      preferred_element_type=jnp.float32)
        return acc + b_ref[...]

    # ---- encoder: Linear + ReLU (activations stay in vregs, fp32) ----
    h = x_ref[...].astype(jnp.float32)
    for w_ref, b_ref in enc:
        h = jnp.maximum(linear(h, w_ref, b_ref), 0.0)

    # ---- fused heads: one matmul producing [TB, 2*hid_p] ----
    heads = linear(h, head_w_ref, head_b_ref)
    hid_p = heads.shape[-1] // 2            # static, lane-tile aligned split
    z_mean = heads[:, :hid_p]
    z_log_var = heads[:, hid_p:]

    # ---- reparameterization: z = mean + eps * exp(0.5 * log_var) (fp32) ----
    z = z_mean + eps_ref[...].astype(jnp.float32) * jnp.exp(0.5 * z_log_var)

    # ---- decoder: Linear (+ReLU for all but last layer) ----
    g = z
    for i, (w_ref, b_ref) in enumerate(dec):
        g = linear(g, w_ref, b_ref)
        if i < n_dec - 1:
            g = jnp.maximum(g, 0.0)

    heads_ref[...] = heads.astype(heads_ref.dtype)
    z_ref[...] = z.astype(z_ref.dtype)
    xmean_ref[...] = g.astype(xmean_ref.dtype)


# ---------------------------------------------------------------------------
# Parameter construction (matches nn.Linear default init distribution:
# U(-1/sqrt(fan_in), 1/sqrt(fan_in)) for weight and bias).
# ---------------------------------------------------------------------------
def _init_linear(key, in_f, out_f, dtype=jnp.float32):
    kw, kb = jax.random.split(key)
    bound = 1.0 / float(in_f) ** 0.5
    w = jax.random.uniform(kw, (in_f, out_f), dtype, minval=-bound, maxval=bound)
    b = jax.random.uniform(kb, (1, out_f), dtype, minval=-bound, maxval=bound)
    return w, b


def init_vae_params(key, encoder_structure, decoder_structure, hidden_num):
    """Unpadded, nn.Linear-equivalent fp32 parameters (weights [in, out])."""
    params = {"encoder": [], "decoder": []}
    for i in range(1, len(encoder_structure)):
        key, sub = jax.random.split(key)
        params["encoder"].append(
            _init_linear(sub, encoder_structure[i - 1], encoder_structure[i]))
    key, sub = jax.random.split(key)
    params["z_layer"] = _init_linear(sub, encoder_structure[-1], hidden_num)
    key, sub = jax.random.split(key)
    params["log_var_layer"] = _init_linear(sub, encoder_structure[-1], hidden_num)
    for i in range(1, len(decoder_structure)):
        key, sub = jax.random.split(key)
        params["decoder"].append(
            _init_linear(sub, decoder_structure[i - 1], decoder_structure[i]))
    return params


def pack_vae_params(raw, encoder_structure, decoder_structure, hidden_num,
                    weight_dtype=jnp.bfloat16):
    """Zero-pad output (lane) dims to multiples of 128, keep the very first
    contraction dim at a sublane multiple only, fuse the two heads into one
    [K, 2*Hp] weight, and store weights in bf16 (biases stay fp32)."""
    assert decoder_structure[0] == hidden_num, \
        "decoder input width must equal hidden_num"
    packed = {"encoder": [], "decoder": []}

    in_p = _round_up(encoder_structure[0], _SUBLANE)     # first K dim: 8-aligned
    enc_p = [in_p] + [_round_up(d, _LANE) for d in encoder_structure[1:]]
    dec_p = [_round_up(d, _LANE) for d in decoder_structure]
    hid_p = _round_up(hidden_num, _LANE)
    dec_p[0] = hid_p                                      # decoder consumes padded z

    for i, (w, b) in enumerate(raw["encoder"]):
        packed["encoder"].append(
            (_pad2d(w, enc_p[i], enc_p[i + 1]).astype(weight_dtype),
             _pad2d(b, 1, enc_p[i + 1])))

    zw, zb = raw["z_layer"]
    lw, lb = raw["log_var_layer"]
    packed["head_w"] = jnp.concatenate(
        [_pad2d(zw, enc_p[-1], hid_p), _pad2d(lw, enc_p[-1], hid_p)],
        axis=1).astype(weight_dtype)
    packed["head_b"] = jnp.concatenate(
        [_pad2d(zb, 1, hid_p), _pad2d(lb, 1, hid_p)], axis=1)

    for i, (w, b) in enumerate(raw["decoder"]):
        packed["decoder"].append(
            (_pad2d(w, dec_p[i], dec_p[i + 1]).astype(weight_dtype),
             _pad2d(b, 1, dec_p[i + 1])))

    packed["dims"] = {
        "in_f": encoder_structure[0], "in_p": in_p,
        "hid_f": hidden_num, "hid_p": hid_p,
        "out_f": decoder_structure[-1], "out_p": dec_p[-1],
    }
    return packed


# ---------------------------------------------------------------------------
# VAE forward (mirrors VAE.forward -> (z_mean, z_log_var, z, x_mean)).
# eps ~ N(0, I) is generated outside (matches torch.randn_like semantics).
# ---------------------------------------------------------------------------
def vae_forward(packed, x, eps, *, batch_tile=128):
    d = packed["dims"]
    B = x.shape[0]
    dtype = x.dtype

    hid_p, out_p, in_p = d["hid_p"], d["out_p"], d["in_p"]

    # Batch tile: multiple of 8 sublanes, aim at MXU height when B allows.
    TB = min(batch_tile, _round_up(B, _SUBLANE))
    TB = _round_up(TB, _SUBLANE)
    B_p = _round_up(B, TB)
    num_tiles = B_p // TB

    x_p = _pad2d(x, B_p, in_p)
    eps_p = _pad2d(eps, B_p, hid_p)

    flat_params = []
    for w, b in packed["encoder"]:
        flat_params += [w, b]
    flat_params += [packed["head_w"], packed["head_b"]]
    for w, b in packed["decoder"]:
        flat_params += [w, b]
    n_enc = len(packed["encoder"])
    n_dec = len(packed["decoder"])

    def tile_spec(feat):
        return pl.BlockSpec((TB, feat), lambda b: (b, 0))

    # Weights: whole-array, VMEM-resident for the entire grid, not pipelined
    # (so they are DMA'd once and not double-buffered).
    weight_spec = pl.BlockSpec(memory_space=pltpu.MemorySpace.VMEM)

    in_specs = [tile_spec(in_p), tile_spec(hid_p)] + [weight_spec] * len(flat_params)
    out_specs = (tile_spec(2 * hid_p), tile_spec(hid_p), tile_spec(out_p))
    out_shape = (
        jax.ShapeDtypeStruct((B_p, 2 * hid_p), dtype),   # heads = [z_mean | z_log_var]
        jax.ShapeDtypeStruct((B_p, hid_p), dtype),       # z
        jax.ShapeDtypeStruct((B_p, out_p), dtype),       # x_mean
    )

    # ---- advisory cost estimate (helps XLA schedule around the call) ----
    kn = sum(int(w.shape[0]) * int(w.shape[1]) for w, _ in packed["encoder"])
    kn += int(packed["head_w"].shape[0]) * int(packed["head_w"].shape[1])
    kn += sum(int(w.shape[0]) * int(w.shape[1]) for w, _ in packed["decoder"])
    flops = 2 * B_p * kn
    transcendentals = B_p * hid_p
    out_bytes = B_p * (2 * hid_p + hid_p + out_p) * 4
    bytes_accessed = int(x_p.nbytes) + int(eps_p.nbytes) \
        + sum(int(p.nbytes) for p in flat_params) + out_bytes

    # ---- explicit VMEM budget: resident weights + 2x (double-buffered) tiles
    weight_bytes = sum(int(p.nbytes) for p in flat_params)
    tile_bytes = TB * (in_p + hid_p + 2 * hid_p + hid_p + out_p) * 4
    vmem_needed = weight_bytes + 2 * tile_bytes + (4 << 20)   # + scratch headroom
    vmem_limit = int(min(64 << 20, max(16 << 20, vmem_needed)))  # v7x-safe cap

    heads_p, z_p, x_mean_p = pl.pallas_call(
        functools.partial(_fused_vae_kernel, n_enc, n_dec),
        out_shape=out_shape,
        grid=(num_tiles,),
        in_specs=in_specs,
        out_specs=out_specs,
        compiler_params=pltpu.CompilerParams(
            dimension_semantics=("parallel",),     # megacore on v7x
            vmem_limit_bytes=vmem_limit),
        cost_estimate=pl.CostEstimate(
            flops=flops, transcendentals=transcendentals,
            bytes_accessed=bytes_accessed),
    )(x_p, eps_p, *flat_params)

    hid_f = d["hid_f"]
    z_mean = heads_p[:B, :hid_f]
    z_log_var = heads_p[:B, hid_p:hid_p + hid_f]
    z = z_p[:B, :hid_f]
    x_mean = x_mean_p[:B, :d["out_f"]]
    return z_mean, z_log_var, z, x_mean


# ---------------------------------------------------------------------------
# Pure-JAX reference (unpadded) that emulates the kernel's numerics:
# bf16 matmul operands, fp32 accumulation, fp32 elementwise.
# ---------------------------------------------------------------------------
def vae_reference(raw, x, eps):
    def mm(a, w):
        return jnp.dot(a.astype(jnp.bfloat16), w.astype(jnp.bfloat16),
                       preferred_element_type=jnp.float32)

    h = x
    for w, b in raw["encoder"]:
        h = jnp.maximum(mm(h, w) + b, 0.0)
    z_mean = mm(h, raw["z_layer"][0]) + raw["z_layer"][1]
    z_log_var = mm(h, raw["log_var_layer"][0]) + raw["log_var_layer"][1]
    z = z_mean + eps * jnp.exp(0.5 * z_log_var)
    g = z
    dec = raw["decoder"]
    for i, (w, b) in enumerate(dec):
        g = mm(g, w) + b
        if i < len(dec) - 1:
            g = jnp.maximum(g, 0.0)
    return z_mean, z_log_var, z, g


# ---------------------------------------------------------------------------
# Demo
# ---------------------------------------------------------------------------
if __name__ == "__main__":
    # Module-consistent shapes; batch large enough to exercise the grid
    # (200 rows -> padded to 256 -> two 128-row grid steps).
    encoder_structure = [64, 48, 32]
    decoder_structure = [16, 32, 64]
    hidden_num = 16
    batch = 200

    key = jax.random.PRNGKey(0)
    key, pkey, xkey, ekey = jax.random.split(key, 4)

    raw_params = init_vae_params(pkey, encoder_structure, decoder_structure, hidden_num)
    packed = pack_vae_params(raw_params, encoder_structure, decoder_structure, hidden_num)

    x = jax.random.normal(xkey, (batch, encoder_structure[0]), jnp.float32)
    eps = jax.random.normal(ekey, (batch, hidden_num), jnp.float32)

    z_mean, z_log_var, z, x_mean = vae_forward(packed, x, eps, batch_tile=128)
    jax.block_until_ready((z_mean, z_log_var, z, x_mean))

    assert z_mean.shape == (batch, hidden_num)
    assert z_log_var.shape == (batch, hidden_num)
    assert z.shape == (batch, hidden_num)
    assert x_mean.shape == (batch, decoder_structure[-1])

    # Numerical check against a reference with the same bf16-matmul numerics.
    r_zm, r_zlv, r_z, r_xm = vae_reference(raw_params, x, eps)
    for name, got, ref in (("z_mean", z_mean, r_zm),
                           ("z_log_var", z_log_var, r_zlv),
                           ("z", z, r_z),
                           ("x_mean", x_mean, r_xm)):
        assert jnp.allclose(got, ref, atol=5e-3, rtol=5e-3), f"{name} mismatch vs reference"

    # TODO(synk): loss()/train() (KL + recon loss, optimizer loop) are host-side
    # training utilities, not part of the forward kernel.
    print("KERNEL_OK")
</pallas_src>

<mosaic_0001>
module attributes {stable_mosaic.version = 11 : i64} {
  func.func @_fused_vae_kernel(%arg0: i32, %arg1: memref<128x64xf32, #tpu.memory_space<vmem>>, %arg2: memref<128x128xf32, #tpu.memory_space<vmem>>, %arg3: memref<64x128xbf16, #tpu.memory_space<vmem>>, %arg4: memref<1x128xf32, #tpu.memory_space<vmem>>, %arg5: memref<128x128xbf16, #tpu.memory_space<vmem>>, %arg6: memref<1x128xf32, #tpu.memory_space<vmem>>, %arg7: memref<128x256xbf16, #tpu.memory_space<vmem>>, %arg8: memref<1x256xf32, #tpu.memory_space<vmem>>, %arg9: memref<128x128xbf16, #tpu.memory_space<vmem>>, %arg10: memref<1x128xf32, #tpu.memory_space<vmem>>, %arg11: memref<128x128xbf16, #tpu.memory_space<vmem>>, %arg12: memref<1x128xf32, #tpu.memory_space<vmem>>, %arg13: memref<128x256xf32, #tpu.memory_space<vmem>>, %arg14: memref<128x128xf32, #tpu.memory_space<vmem>>, %arg15: memref<128x128xf32, #tpu.memory_space<vmem>>) attributes {dimension_semantics = [#tpu.dimension_semantics<parallel>], iteration_bounds = array<i64: 2>, scalar_prefetch = 0 : i64, scratch_operands = 0 : i64, tpu.core_type = #tpu.core_type<tc>, window_params = [{transform_indices = @transform_0, window_bounds = array<i64: 128, 64>}, {transform_indices = @transform_1, window_bounds = array<i64: 128, 128>}, {pipeline_mode = #tpu.pipeline_mode<synchronous>, transform_indices = @transform_2, window_bounds = array<i64: 64, 128>}, {pipeline_mode = #tpu.pipeline_mode<synchronous>, transform_indices = @transform_3, window_bounds = array<i64: 1, 128>}, {pipeline_mode = #tpu.pipeline_mode<synchronous>, transform_indices = @transform_4, window_bounds = array<i64: 128, 128>}, {pipeline_mode = #tpu.pipeline_mode<synchronous>, transform_indices = @transform_5, window_bounds = array<i64: 1, 128>}, {pipeline_mode = #tpu.pipeline_mode<synchronous>, transform_indices = @transform_6, window_bounds = array<i64: 128, 256>}, {pipeline_mode = #tpu.pipeline_mode<synchronous>, transform_indices = @transform_7, window_bounds = array<i64: 1, 256>}, {pipeline_mode = #tpu.pipeline_mode<synchronous>, transform_indices = @transform_8, window_bounds = array<i64: 128, 128>}, {pipeline_mode = #tpu.pipeline_mode<synchronous>, transform_indices = @transform_9, window_bounds = array<i64: 1, 128>}, {pipeline_mode = #tpu.pipeline_mode<synchronous>, transform_indices = @transform_10, window_bounds = array<i64: 128, 128>}, {pipeline_mode = #tpu.pipeline_mode<synchronous>, transform_indices = @transform_11, window_bounds = array<i64: 1, 128>}, {transform_indices = @transform_12, window_bounds = array<i64: 128, 256>}, {transform_indices = @transform_13, window_bounds = array<i64: 128, 128>}, {transform_indices = @transform_14, window_bounds = array<i64: 128, 128>}]} {
    %c0 = arith.constant 0 : index
    %c0_0 = arith.constant 0 : index
    %0 = vector.load %arg1[%c0, %c0_0] : memref<128x64xf32, #tpu.memory_space<vmem>>, vector<128x64xf32>
    %1 = arith.truncf %0 : vector<128x64xf32> to vector<128x64xbf16>
    %c0_1 = arith.constant 0 : index
    %c0_2 = arith.constant 0 : index
    %2 = vector.load %arg3[%c0_1, %c0_2] : memref<64x128xbf16, #tpu.memory_space<vmem>>, vector<64x128xbf16>
    %cst = arith.constant dense<0.000000e+00> : vector<128x128xf32>
    %3 = tpu.matmul %1, %2, %cst {dimension_numbers = #tpu.dot_dimension_numbers<[1], [0], [0], [1], [0, 0, 1, 1], [], []>} : vector<128x64xbf16>, vector<64x128xbf16>, vector<128x128xf32> -> vector<128x128xf32>
    %c0_3 = arith.constant 0 : index
    %c0_4 = arith.constant 0 : index
    %4 = vector.load %arg4[%c0_3, %c0_4] : memref<1x128xf32, #tpu.memory_space<vmem>>, vector<1x128xf32>
    %5 = vector.broadcast %4 : vector<1x128xf32> to vector<128x128xf32>
    %6 = arith.addf %3, %5 : vector<128x128xf32>
    %cst_5 = arith.constant 0.000000e+00 : f32
    %7 = vector.broadcast %cst_5 : f32 to vector<128x128xf32>
    %8 = arith.maximumf %6, %7 : vector<128x128xf32>
    %9 = arith.truncf %8 : vector<128x128xf32> to vector<128x128xbf16>
    %c0_6 = arith.constant 0 : index
    %c0_7 = arith.constant 0 : index
    %10 = vector.load %arg5[%c0_6, %c0_7] : memref<128x128xbf16, #tpu.memory_space<vmem>>, vector<128x128xbf16>
    %cst_8 = arith.constant dense<0.000000e+00> : vector<128x128xf32>
    %11 = tpu.matmul %9, %10, %cst_8 {dimension_numbers = #tpu.dot_dimension_numbers<[1], [0], [0], [1], [0, 0, 1, 1], [], []>} : vector<128x128xbf16>, vector<128x128xbf16>, vector<128x128xf32> -> vector<128x128xf32>
    %c0_9 = arith.constant 0 : index
    %c0_10 = arith.constant 0 : index
    %12 = vector.load %arg6[%c0_9, %c0_10] : memref<1x128xf32, #tpu.memory_space<vmem>>, vector<1x128xf32>
    %13 = vector.broadcast %12 : vector<1x128xf32> to vector<128x128xf32>
    %14 = arith.addf %11, %13 : vector<128x128xf32>
    %cst_11 = arith.constant 0.000000e+00 : f32
    %15 = vector.broadcast %cst_11 : f32 to vector<128x128xf32>
    %16 = arith.maximumf %14, %15 : vector<128x128xf32>
    %17 = arith.truncf %16 : vector<128x128xf32> to vector<128x128xbf16>
    %c0_12 = arith.constant 0 : index
    %c0_13 = arith.constant 0 : index
    %18 = vector.load %arg7[%c0_12, %c0_13] : memref<128x256xbf16, #tpu.memory_space<vmem>>, vector<128x256xbf16>
    %cst_14 = arith.constant dense<0.000000e+00> : vector<128x256xf32>
    %19 = tpu.matmul %17, %18, %cst_14 {dimension_numbers = #tpu.dot_dimension_numbers<[1], [0], [0], [1], [0, 0, 1, 1], [], []>} : vector<128x128xbf16>, vector<128x256xbf16>, vector<128x256xf32> -> vector<128x256xf32>
    %c0_15 = arith.constant 0 : index
    %c0_16 = arith.constant 0 : index
    %20 = vector.load %arg8[%c0_15, %c0_16] : memref<1x256xf32, #tpu.memory_space<vmem>>, vector<1x256xf32>
    %21 = vector.broadcast %20 : vector<1x256xf32> to vector<128x256xf32>
    %22 = arith.addf %19, %21 : vector<128x256xf32>
    %23 = vector.extract_strided_slice %22 {offsets = [0, 0], sizes = [128, 128], strides = [1, 1]} : vector<128x256xf32> to vector<128x128xf32>
    %24 = vector.extract_strided_slice %22 {offsets = [0, 128], sizes = [128, 128], strides = [1, 1]} : vector<128x256xf32> to vector<128x128xf32>
    %c0_17 = arith.constant 0 : index
    %c0_18 = arith.constant 0 : index
    %25 = vector.load %arg2[%c0_17, %c0_18] : memref<128x128xf32, #tpu.memory_space<vmem>>, vector<128x128xf32>
    %cst_19 = arith.constant 5.000000e-01 : f32
    %26 = vector.broadcast %cst_19 : f32 to vector<128x128xf32>
    %27 = arith.mulf %26, %24 : vector<128x128xf32>
    %28 = math.exp %27 : vector<128x128xf32>
    %29 = arith.mulf %25, %28 : vector<128x128xf32>
    %30 = arith.addf %23, %29 : vector<128x128xf32>
    %31 = arith.truncf %30 : vector<128x128xf32> to vector<128x128xbf16>
    %c0_20 = arith.constant 0 : index
    %c0_21 = arith.constant 0 : index
    %32 = vector.load %arg9[%c0_20, %c0_21] : memref<128x128xbf16, #tpu.memory_space<vmem>>, vector<128x128xbf16>
    %cst_22 = arith.constant dense<0.000000e+00> : vector<128x128xf32>
    %33 = tpu.matmul %31, %32, %cst_22 {dimension_numbers = #tpu.dot_dimension_numbers<[1], [0], [0], [1], [0, 0, 1, 1], [], []>} : vector<128x128xbf16>, vector<128x128xbf16>, vector<128x128xf32> -> vector<128x128xf32>
    %c0_23 = arith.constant 0 : index
    %c0_24 = arith.constant 0 : index
    %34 = vector.load %arg10[%c0_23, %c0_24] : memref<1x128xf32, #tpu.memory_space<vmem>>, vector<1x128xf32>
    %35 = vector.broadcast %34 : vector<1x128xf32> to vector<128x128xf32>
    %36 = arith.addf %33, %35 : vector<128x128xf32>
    %cst_25 = arith.constant 0.000000e+00 : f32
    %37 = vector.broadcast %cst_25 : f32 to vector<128x128xf32>
    %38 = arith.maximumf %36, %37 : vector<128x128xf32>
    %39 = arith.truncf %38 : vector<128x128xf32> to vector<128x128xbf16>
    %c0_26 = arith.constant 0 : index
    %c0_27 = arith.constant 0 : index
    %40 = vector.load %arg11[%c0_26, %c0_27] : memref<128x128xbf16, #tpu.memory_space<vmem>>, vector<128x128xbf16>
    %cst_28 = arith.constant dense<0.000000e+00> : vector<128x128xf32>
    %41 = tpu.matmul %39, %40, %cst_28 {dimension_numbers = #tpu.dot_dimension_numbers<[1], [0], [0], [1], [0, 0, 1, 1], [], []>} : vector<128x128xbf16>, vector<128x128xbf16>, vector<128x128xf32> -> vector<128x128xf32>
    %c0_29 = arith.constant 0 : index
    %c0_30 = arith.constant 0 : index
    %42 = vector.load %arg12[%c0_29, %c0_30] : memref<1x128xf32, #tpu.memory_space<vmem>>, vector<1x128xf32>
    %43 = vector.broadcast %42 : vector<1x128xf32> to vector<128x128xf32>
    %44 = arith.addf %41, %43 : vector<128x128xf32>
    %c0_31 = arith.constant 0 : index
    %c0_32 = arith.constant 0 : index
    %45 = vector.load %arg13[%c0_31, %c0_32] : memref<128x256xf32, #tpu.memory_space<vmem>>, vector<128x256xf32>
    tpu.vector_store %arg13[%c0_31, %c0_32], %22 {strides = array<i32>} : memref<128x256xf32, #tpu.memory_space<vmem>>, vector<128x256xf32>,
    %c0_33 = arith.constant 0 : index
    %c0_34 = arith.constant 0 : index
    %46 = vector.load %arg14[%c0_33, %c0_34] : memref<128x128xf32, #tpu.memory_space<vmem>>, vector<128x128xf32>
    tpu.vector_store %arg14[%c0_33, %c0_34], %30 {strides = array<i32>} : memref<128x128xf32, #tpu.memory_space<vmem>>, vector<128x128xf32>,
    %c0_35 = arith.constant 0 : index
    %c0_36 = arith.constant 0 : index
    %47 = vector.load %arg15[%c0_35, %c0_36] : memref<128x128xf32, #tpu.memory_space<vmem>>, vector<128x128xf32>
    tpu.vector_store %arg15[%c0_35, %c0_36], %44 {strides = array<i32>} : memref<128x128xf32, #tpu.memory_space<vmem>>, vector<128x128xf32>,
    return
  }
  func.func @transform_0(%arg0: i32) -> (i32, i32) {
    %c0_i32 = arith.constant 0 : i32
    %c0_i32_0 = arith.constant 0 : i32
    return %arg0, %c0_i32 : i32, i32
  }
  func.func @transform_1(%arg0: i32) -> (i32, i32) {
    %c0_i32 = arith.constant 0 : i32
    %c0_i32_0 = arith.constant 0 : i32
    return %arg0, %c0_i32 : i32, i32
  }
  func.func @transform_2(%arg0: i32) -> (i32, i32) {
    %c0_i32 = arith.constant 0 : i32
    %c0_i32_0 = arith.constant 0 : i32
    %c0_i32_1 = arith.constant 0 : i32
    return %c0_i32, %c0_i32_0 : i32, i32
  }
  func.func @transform_3(%arg0: i32) -> (i32, i32) {
    %c0_i32 = arith.constant 0 : i32
    %c0_i32_0 = arith.constant 0 : i32
    %c0_i32_1 = arith.constant 0 : i32
    return %c0_i32, %c0_i32_0 : i32, i32
  }
  func.func @transform_4(%arg0: i32) -> (i32, i32) {
    %c0_i32 = arith.constant 0 : i32
    %c0_i32_0 = arith.constant 0 : i32
    %c0_i32_1 = arith.constant 0 : i32
    return %c0_i32, %c0_i32_0 : i32, i32
  }
  func.func @transform_5(%arg0: i32) -> (i32, i32) {
    %c0_i32 = arith.constant 0 : i32
    %c0_i32_0 = arith.constant 0 : i32
    %c0_i32_1 = arith.constant 0 : i32
    return %c0_i32, %c0_i32_0 : i32, i32
  }
  func.func @transform_6(%arg0: i32) -> (i32, i32) {
    %c0_i32 = arith.constant 0 : i32
    %c0_i32_0 = arith.constant 0 : i32
    %c0_i32_1 = arith.constant 0 : i32
    return %c0_i32, %c0_i32_0 : i32, i32
  }
  func.func @transform_7(%arg0: i32) -> (i32, i32) {
    %c0_i32 = arith.constant 0 : i32
    %c0_i32_0 = arith.constant 0 : i32
    %c0_i32_1 = arith.constant 0 : i32
    return %c0_i32, %c0_i32_0 : i32, i32
  }
  func.func @transform_8(%arg0: i32) -> (i32, i32) {
    %c0_i32 = arith.constant 0 : i32
    %c0_i32_0 = arith.constant 0 : i32
    %c0_i32_1 = arith.constant 0 : i32
    return %c0_i32, %c0_i32_0 : i32, i32
  }
  func.func @transform_9(%arg0: i32) -> (i32, i32) {
    %c0_i32 = arith.constant 0 : i32
    %c0_i32_0 = arith.constant 0 : i32
    %c0_i32_1 = arith.constant 0 : i32
    return %c0_i32, %c0_i32_0 : i32, i32
  }
  func.func @transform_10(%arg0: i32) -> (i32, i32) {
    %c0_i32 = arith.constant 0 : i32
    %c0_i32_0 = arith.constant 0 : i32
    %c0_i32_1 = arith.constant 0 : i32
    return %c0_i32, %c0_i32_0 : i32, i32
  }
  func.func @transform_11(%arg0: i32) -> (i32, i32) {
    %c0_i32 = arith.constant 0 : i32
    %c0_i32_0 = arith.constant 0 : i32
    %c0_i32_1 = arith.constant 0 : i32
    return %c0_i32, %c0_i32_0 : i32, i32
  }
  func.func @transform_12(%arg0: i32) -> (i32, i32) {
    %c0_i32 = arith.constant 0 : i32
    %c0_i32_0 = arith.constant 0 : i32
    return %arg0, %c0_i32 : i32, i32
  }
  func.func @transform_13(%arg0: i32) -> (i32, i32) {
    %c0_i32 = arith.constant 0 : i32
    %c0_i32_0 = arith.constant 0 : i32
    return %arg0, %c0_i32 : i32, i32
  }
  func.func @transform_14(%arg0: i32) -> (i32, i32) {
    %c0_i32 = arith.constant 0 : i32
    %c0_i32_0 = arith.constant 0 : i32
    return %arg0, %c0_i32 : i32, i32
  }
}

</mosaic_0001>

<bundles_post_ra>
// kernel: tpu_custom_call.1
= control target key start
LH: loop header
LB: loop body
LE: loop exit
PB: predicated region body
PF: predicated region fallthrough
CT: control target
= control target key end

     0   :  { %s3393_s0 = inlined_call_operand.vmem [shape: f32[256,64], index: 0, kind: input, shape index: {}]   ;;  %s3394_s1 = inlined_call_operand.vmem [shape: f32[256,128], index: 1, kind: input, shape index: {}]   ;;  %s3395_s2 = inlined_call_operand.hbm [shape: bf16[64,128], index: 2, kind: input, shape index: {}]   ;;  %s3396_s3 = inlined_call_operand.vmem [shape: f32[1,128], index: 3, kind: input, shape index: {}]   ;;  %s3397_s4 = inlined_call_operand.hbm [shape: bf16[128,128], index: 4, kind: input, shape index: {}]   ;;  %s3398_s5 = inlined_call_operand.vmem [shape: f32[1,128], index: 5, kind: input, shape index: {}]   ;;  %s3399_s6 = inlined_call_operand.vmem [shape: bf16[128,256], index: 6, kind: input, shape index: {}]   ;;  %s3400_s7 = inlined_call_operand.vmem [shape: f32[1,256], index: 7, kind: input, shape index: {}]   ;;  %s3401_s8 = inlined_call_operand.hbm [shape: bf16[128,128], index: 8, kind: input, shape index: {}]   ;;  %s3402_s9 = inlined_call_operand.vmem [shape: f32[1,128], index: 9, kind: input, shape index: {}]   ;;  %s3403_s10 = inlined_call_operand.hbm [shape: bf16[128,128], index: 10, kind: input, shape index: {}]   ;;  %s3404_s11 = inlined_call_operand.vmem [shape: f32[1,128], index: 11, kind: input, shape index: {}]   ;;  %s3405_s12 = inlined_call_operand.hbm [shape: f32[256,256], index: 12, kind: output, shape index: {0}]   ;;  %s3406_s13 = inlined_call_operand.hbm [shape: f32[256,128], index: 13, kind: output, shape index: {1}]   ;;  %s3407_s14 = inlined_call_operand.hbm [shape: f32[256,128], index: 14, kind: output, shape index: {2}]  }
   0x1   :  { %3424 = sst [smem:[#allocation25_spill]] %s3404_s11 }
   0x2   :  { %3425 = sst [smem:[#allocation26_spill]] %s3405_s12 }
   0x3   :  { %3426 = sst [smem:[#allocation27_spill]] %s3406_s13 }
   0x4   :  { %3427 = sst [smem:[#allocation28_spill]] %s3407_s14 }
   0x5   :  { %20 = vsyncpa [#allocation3], 0 }
   0x6   :  { %21 = vsyncpa [#allocation6], 0 }
   0x7   :  { %22 = vsyncpa [#allocation9], 0 }
   0x8   :  { %23 = vsyncpa [#allocation4], 0 }
   0x9   :  { %25 = vsyncpa [#allocation4 + $0x1], 0 }
   0xa   :  { %26 = vsyncpa [#allocation12], 0 }
   0xb   :  { %28 = vsyncpa [#allocation12 + $0x1], 0  ;;  %s2759_s29 = smov 0   ;;  %s2761_s30 = smov 0  }
   0xc   :  { %s2763_s15 = smov 0   ;;  %s2765_s16 = smov 0  }
   0xd LB: > { %3428 = sst [smem:[#allocation19_spill]] %s2656_s29  ;;  %s2780_s17 = sadd.s32 4294967295, %s2668_s16   ;;  %s2668_s16 = sphi %s2765_s16, %s3459_s16   ;;  %s2664_s15 = sphi %s2763_s15, %s3461_s15   ;;  %s2660_s30 = sphi %s2761_s30, %s3463_s30   ;;  %s2656_s29 = sphi %s2759_s29, %s3462_s29  }
   0xe   : > { %3429 = sst [smem:[#allocation20_spill]] %s2664_s15  ;;  %s3408_s18 = sadd.s32 4294967294, %s2668_s16  }
   0xf   : > { %3430 = sst [smem:[#allocation21_spill]] %s2668_s16  ;;  %s2784_s19 = sadd.s32 1, %s2668_s16  }
  0x10   : > { %3431 = sst [smem:[#allocation22_spill]] %s2784_s19  ;;  %s303_s20 = sadd.s32 1, %s2664_s15 }
  0x11   : > { %s300_s21 = ssub.s32 %s2668_s16, %s2784_s19  ;;  %p313_p0 = scmp.ne.s32.totalorder %s2664_s15, %s2660_s30 }
  0x12   : > { %p301_p1 = scmp.eq.s32.totalorder %s300_s21, 0  ;;  %p314_p2 = scmp.eq.s32.totalorder %s2780_s17, 1 }
  0x13   : > { %p319_p3 = scmp.ne.s32.totalorder %s2660_s30, %s2656_s29  ;;  %p320_p4 = scmp.eq.s32.totalorder %s3408_s18, 1 }
  0x14   : > { %s2797_s22 = scalar_select %p301_p1, %s2664_s15, %s303_s20  }
  0x15   : > { %p2799_p5 = por %p314_p2, %p313_p0  ;;  %p2803_p6 = por %p320_p4, %p319_p3 }
  0x16   : > { %3432 = sst [smem:[#allocation23_spill]] %s2797_s22  ;;  %p1955_p7 = scmp.ge.s32.totalorder %s2668_s16, 1 }
  0x17   : > { %s3433_s23 = scalar_select %p2799_p5, 1, 0 }
  0x18   : > { %s3434_s24 = scalar_select %p2803_p6, 1, 0 }
  0x19   : > { %p379_p8 = scmp.lt.s32.totalorder %s2668_s16, 3  ;;  %p3416_p9 = scmp.eq.s32.totalorder %s2780_s17, 0 }
  0x1a   : > { %3435 = sst [smem:[#allocation24_spill]] %s3434_s24  ;;  %s2670_s26 = smov [#allocation5]  }
  0x1b   : > { %p2810_p10 = pnand %p1955_p7, %p379_p8  ;;  %s407_s27 = sshll.u32 %s2670_s26, 4  ;;  %s2816_s27 = int_to_ptr.vmem [resolvable:$true] %s407_s27 }
  0x1c   : > { %s2671_s20 = smov [#allocation2]   ;;  %s2672_s18 = smov [#allocation7]  }
  0x1d   : > { %s3436_s25 = scalar_select %p2810_p10, 1, 0 }
  0x1e   : > { %p2263_p11 = pneg %p2810_p10  ;;  %s391_s21 = sshll.u32 %s2671_s20, 4  ;;  %s2824_s21 = int_to_ptr.vmem [resolvable:$true] %s391_s21 }
  0x1f   : > { %s2826_s22 = sshll.u32 %s2672_s18, 4  ;;  %s2422_s24 = scalar_lea.hbm %s3397_s4, 1024  ;;  %s430_s22 = int_to_ptr.vmem [resolvable:$true] %s2826_s22 }
  0x20   : > { %p2820_p12 = pnand %p3416_p9, %p2263_p11  ;;  %p2423_p13 = scmp.ne.s32.totalorder %s3397_s4, %s2422_s24 }
  0x21   : > { %p2429_p3 = scmp.lt.u32.totalorder %s2422_s24, %s3397_s4 }
  0x22   : > { %p2836_p0 = pneg %p2820_p12 }
  0x24   : > { %p2425_p1 = pnand %p2836_p0, %p2423_p13 }
  0x26   : > { %p2426_p2 = pneg %p2425_p1 }
  0x28   : > { %p2431_p4 = pnand %p2429_p3, %p2426_p2 }
  0x2a   : > { %2434 = shalt.err (!%p2431_p4)
}
  0x2b   : > { %s2435_s29 = scalar_lea.vmem %s2816_s27, 1024  ;;  %p2443_p9 = scmp.lt.s32.totalorder %s2816_s27, %s2816_s27 }
  0x2c   : > { %p2436_p7 = scmp.ne.s32.totalorder %s2816_s27, %s2435_s29  ;;  %p2444_p6 = scmp.lt.s32.totalorder %s2435_s29, %s2435_s29 }
  0x2e   : > { %p2438_p8 = pnand %p2436_p7, %p2836_p0  ;;  %p2445_p13 = por %p2444_p6, %p2443_p9 }
  0x30   : > { %p2439_p11 = pneg %p2438_p8 }
  0x32   : > { %p2446_p1 = pnand %p2445_p13, %p2439_p11 }
  0x34   : > { %2449 = shalt.err (!%p2446_p1)
}
  0x35   : > { %s2673_s15 = smov 64   ;;  %s2674_s19 = smov 4  }
  0x36   : > { %2269 = dma.hbm_to_vmem [thread:$0]  (!%p2820_p12), %s3397_s4, 1024, %s2816_s27, [#allocation6], %s2673_s15, %s2673_s15, %s2674_s19  }
  0x37   : > { %s2450_s29 = scalar_lea.hbm %s3395_s2, 512 }
  0x38   : > { %p2451_p6 = scmp.ne.s32.totalorder %s3395_s2, %s2450_s29  ;;  %p2457_p3 = scmp.lt.u32.totalorder %s2450_s29, %s3395_s2 }
  0x3a   : > { %p2453_p9 = pnand %p2451_p6, %p2836_p0 }
  0x3c   : > { %p2454_p2 = pneg %p2453_p9 }
  0x3e   : > { %p2459_p4 = pnand %p2457_p3, %p2454_p2 }
  0x40   : > { %2462 = shalt.err (!%p2459_p4)
}
  0x41   : > { %s2463_s27 = scalar_lea.vmem %s2824_s21, 512  ;;  %p2471_p13 = scmp.lt.s32.totalorder %s2824_s21, %s2824_s21 }
  0x42   : > { %p2464_p7 = scmp.ne.s32.totalorder %s2824_s21, %s2463_s27  ;;  %p2472_p1 = scmp.lt.s32.totalorder %s2463_s27, %s2463_s27 }
  0x44   : > { %p2466_p8 = pnand %p2464_p7, %p2836_p0  ;;  %p2473_p6 = por %p2472_p1, %p2471_p13 }
  0x46   : > { %p2467_p11 = pneg %p2466_p8 }
  0x48   : > { %p2474_p9 = pnand %p2473_p6, %p2467_p11 }
  0x4a   : > { %2477 = shalt.err (!%p2474_p9)
}
  0x4b   : > { %2266 = dma.hbm_to_vmem [thread:$0]  (!%p2820_p12), %s3395_s2, 512, %s2824_s21, [#allocation3], %s2673_s15, %s2673_s15, %s2674_s19  }
  0x4c   : > { %s2478_s24 = scalar_lea.hbm %s3401_s8, 1024 }
  0x4d   : > { %p2479_p2 = scmp.ne.s32.totalorder %s3401_s8, %s2478_s24  ;;  %p2485_p7 = scmp.lt.u32.totalorder %s2478_s24, %s3401_s8 }
  0x4f   : > { %p2481_p3 = pnand %p2479_p2, %p2836_p0 }
  0x51   : > { %p2482_p4 = pneg %p2481_p3 }
  0x53   : > { %p2487_p8 = pnand %p2485_p7, %p2482_p4 }
  0x55   : > { %2490 = shalt.err (!%p2487_p8)
}
  0x56   : > { %s2491_s27 = scalar_lea.vmem %s430_s22, 1024  ;;  %p2499_p6 = scmp.lt.s32.totalorder %s430_s22, %s430_s22 }
  0x57   : > { %p2492_p11 = scmp.ne.s32.totalorder %s430_s22, %s2491_s27  ;;  %p2500_p9 = scmp.lt.s32.totalorder %s2491_s27, %s2491_s27 }
  0x59   : > { %p2494_p13 = pnand %p2492_p11, %p2836_p0  ;;  %p2501_p5 = por %p2500_p9, %p2499_p6 }
  0x5b   : > { %p2495_p1 = pneg %p2494_p13 }
  0x5d   : > { %p2502_p10 = pnand %p2501_p5, %p2495_p1 }
  0x5f   : > { %2505 = shalt.err (!%p2502_p10)
}
  0x60   : > { %2272 = dma.hbm_to_vmem [thread:$0]  (!%p2820_p12), %s3401_s8, 1024, %s430_s22, [#allocation6], %s2673_s15, %s2673_s15, %s2674_s19  }
  0x61   : > { %s2675_s12 = smov [#allocation8]   ;;  %s2506_s26 = scalar_lea.hbm %s3403_s10, 1024 }
  0x62   : > { %s445_s13 = sshll.u32 %s2675_s12, 4  ;;  %p2507_p5 = scmp.ne.s32.totalorder %s3403_s10, %s2506_s26  ;;  %s446_s13 = int_to_ptr.vmem [resolvable:$true] %s445_s13 }
  0x63   : > { %p2513_p3 = scmp.lt.u32.totalorder %s2506_s26, %s3403_s10 }
  0x64   : > { %p2509_p10 = pnand %p2507_p5, %p2836_p0 }
  0x66   : > { %p2510_p2 = pneg %p2509_p10 }
  0x68   : > { %p2515_p4 = pnand %p2513_p3, %p2510_p2 }
  0x6a   : > { %2518 = shalt.err (!%p2515_p4)
}
  0x6b   : > { %s2519_s22 = scalar_lea.vmem %s446_s13, 1024  ;;  %p2527_p13 = scmp.lt.s32.totalorder %s446_s13, %s446_s13 }
  0x6c   : > { %p2520_p7 = scmp.ne.s32.totalorder %s446_s13, %s2519_s22  ;;  %p2528_p1 = scmp.lt.s32.totalorder %s2519_s22, %s2519_s22 }
  0x6e   : > { %p2522_p8 = pnand %p2520_p7, %p2836_p0  ;;  %p2529_p6 = por %p2528_p1, %p2527_p13 }
  0x70   : > { %p2523_p11 = pneg %p2522_p8 }
  0x72   : > { %p2530_p9 = pnand %p2529_p6, %p2523_p11 }
  0x74   : > { %2533 = shalt.err (!%p2530_p9)
}
  0x75   : > { %2275 = dma.hbm_to_vmem [thread:$0]  (!%p2820_p12), %s3403_s10, 1024, %s446_s13, [#allocation9], %s2673_s15, %s2673_s15, %s2674_s19  }
  0x76   : > { %p3439_p5 = scmp.ne.s32.totalorder %s3436_s25, 0 }
  0x77   : > { %p3440_p0 = scmp.eq.s32.totalorder (!%p3439_p5), %s2780_s17, 0 }
  0x78   : > { %482 = sbr.rel (%p3439_p5) target bundleno = 1341 (0x53d), region = 68 }
  0x7f   : > { %2635 = dma.done.wait (%p3440_p0), [#allocation3], 512   ;;  %p3441_p10 = pmov %p3440_p0 }
  0x80   : > { %p3442_p2 = pmov %p3440_p0 }
  0x81   : > { %2637 = vsyncadd (%p3441_p10), [#allocation3], 4294966784 }
  0x82   : > { %2639 = dma.done.wait (%p3442_p2), [#allocation6], 2048   ;;  %p3443_p3 = pmov %p3440_p0 }
  0x83   : > { %p3444_p4 = pmov %p3440_p0 }
  0x84   : > { %2641 = vsyncadd (%p3443_p3), [#allocation6], 4294965248 }
  0x85   : > { %2643 = dma.done.wait (%p3444_p4), [#allocation9], 1024   ;;  %p3445_p12 = pmov %p3440_p0 }
  0x86   : > { %s1969_s16 = sshll.u32 %s2780_s17, 4  ;;  %v2338_v0 = vld [vmem:[#allocation2] sm:$0xff]   ;;  %v2339_v1 = vld [vmem:[#allocation2 + $0x8] sm:$0xff]   ;;  %v2340_v2 = vld [vmem:[#allocation2 + $0x10] sm:$0xff]   ;;  %vm634_vm0 = vcmask 523264   ;;  %s3066_s18 = sand.u32 1, %s2660_s30  }
  0x87   : > { %2645 = vsyncadd (%p3445_p12), [#allocation9], 4294966272  ;;  %p556_p7 = scmp.lt.s32.totalorder %s1969_s16, 31  ;;  %2105 = vmatprep.subr.bf16.mxu0 %v2338_v0  ;;  %v2341_v6 = vld [vmem:[#allocation2 + $0x18] sm:$0xff]   ;;  %v2342_v10 = vld [vmem:[#allocation5] sm:$0xff]   ;;  %s1966_s22 = sshll.u32 %s3066_s18, 8 }
  0x88   : > { %2106 = vmatpush3.bf16.msra.mxu0 %v2338_v0  ;;  %v2343_v11 = vld [vmem:[#allocation5 + $0x8] sm:$0xff]   ;;  %2129 = vmatprep.subr.bf16.mxu1 %v2342_v10  ;;  %v2344_v14 = vld [vmem:[#allocation5 + $0x10] sm:$0xff]   ;;  %v2345_v16 = vld [vmem:[#allocation5 + $0x18] sm:$0xff]   ;;  %s3078_s21 = scalar_lea.vmem [#allocation10], %s1966_s22  ;;  %s1726_s13 = sand.u32 1, %s2780_s17  }
  0x89   : > { %s3465_s16 = smov (!%p556_p7, %s1969_s16), 31  ;;  %2107 = vmatprep.subr.bf16.mxu0 %v2339_v1  ;;  %2130 = vmatpush3.bf16.msra.mxu1 %v2342_v10  ;;  %v2346_v21 = vld [vmem:[#allocation5 + $0x20] sm:$0xff]   ;;  %v2347_v24 = vld [vmem:[#allocation5 + $0x28] sm:$0xff]   ;;  %v2348_v34 = vld [vmem:[#allocation5 + $0x30] sm:$0xff]   ;;  %s3422_s14 = sshll.u32 %s2780_s17, 11 }
  0x8a   : > { %s1970_s25 = sshll.u32 %s3465_s16, 3  ;;  %2131 = vmatprep.subr.bf16.mxu1 %v2343_v11  ;;  %v2349_v35 = vld [vmem:[#allocation5 + $0x38] sm:$0xff]   ;;  %v2350_v36 = vld [vmem:[%s3399_s6] ss:$8 sps:$4 sm:$0xff]   ;;  %v2352_v37 = vld [vmem:[%s3399_s6 + $0x4] ss:$8 sps:$4 sm:$0xff]  }
  0x8b   : > { %s2952_s19 = scalar_lea.vmem %s3393_s0, %s1970_s25  ;;  %v2355_v38 = vld [vmem:[%s3399_s6 + $0x14] ss:$8 sps:$4 sm:$0xff]   ;;  %v2353_v39 = vld [vmem:[%s3399_s6 + $0x10] ss:$8 sps:$4 sm:$0xff]   ;;  %v2358_v40 = vld [vmem:[%s3399_s6 + $0x24] ss:$8 sps:$4 sm:$0xff]   ;;  %s3102_s15 = scalar_lea.vmem %s3394_s1, %s1970_s25 }
  0x8c   : > { %v571_v3 = vld [vmem:[%s2952_s19] sm:$0xff]  ;;  %v572_v4 = vld [vmem:[%s2952_s19 + $0x8] sm:$0xff]  ;;  %2108 = vmatpush3.bf16.msra.mxu0 %v2339_v1  ;;  %v573_v7 = vld [vmem:[%s2952_s19 + $0x10] sm:$0xff]  ;;  %s3423_s16 = sshll.u32 %s3066_s18, 7  ;;  %s3446_s20 = sld [smem:[#allocation27_spill]] }
  0x8d   : > { %v587_v5 = vpack.c.bf16 %v572_v4, %v571_v3  ;;  %2109 = vmatprep.subr.bf16.mxu0 %v2340_v2  ;;  %v574_v8 = vld [vmem:[%s2952_s19 + $0x18] sm:$0xff]  ;;  %v575_v9 = vld [vmem:[%s2952_s19 + $0x20] sm:$0xff]  ;;  %v576_v12 = vld [vmem:[%s2952_s19 + $0x28] sm:$0xff]  ;;  %2132 = vmatpush3.bf16.msra.mxu1 %v2343_v11  ;;  %s3126_s25 = scalar_lea.vmem [#allocation11], %s3423_s16  ;;  %s3256_s22 = scalar_lea.sflag [#allocation12], %s1726_s13 }
  0x8e   : > { %v588_v13 = vpack.c.bf16 %v574_v8, %v573_v7  ;;  %v589_v15 = vpack.c.bf16 %v576_v12, %v575_v9  ;;  %v577_v17 = vld [vmem:[%s2952_s19 + $0x30] sm:$0xff]  ;;  %v578_v18 = vld [vmem:[%s2952_s19 + $0x38] sm:$0xff]  ;;  %v579_v19 = vld [vmem:[%s2952_s19 + $0x40] sm:$0xff]  ;;  %2133 = vmatprep.subr.bf16.mxu1 %v2344_v14  ;;  %s1762_s27 = sshll.u32 %s3126_s25, 4  ;;  %p3447_p11 = scmp.ne.s32.totalorder %s3433_s23, 0  ;;  %s3254_s27 = int_to_ptr.vmem [resolvable:$true] %s1762_s27 }
  0x8f   : > { %2113 = vmatprep.mubr.msk.bf16.mxu0 %vm634_vm0, %v587_v5  ;;  %v580_v20 = vld [vmem:[%s2952_s19 + $0x48] sm:$0xff]  ;;  %v590_v22 = vpack.c.bf16 %v578_v18, %v577_v17  ;;  %v581_v25 = vld [vmem:[%s2952_s19 + $0x50] sm:$0xff]  ;;  %v582_v26 = vld [vmem:[%s2952_s19 + $0x58] sm:$0xff]  ;;  %s2534_s11 = scalar_lea.vmem %s3254_s27, 2048  ;;  %s2677_s28 = smov [#allocation11]  }
  0x90   : > { %2110 = vmatpush3.bf16.msra.mxu0 %v2340_v2  ;;  %v591_v23 = vpack.c.bf16 %v580_v20, %v579_v19  ;;  %v583_v27 = vld [vmem:[%s2952_s19 + $0x60] sm:$0xff]  ;;  %v584_v28 = vld [vmem:[%s2952_s19 + $0x68] sm:$0xff]  ;;  %v592_v29 = vpack.c.bf16 %v582_v26, %v581_v25  ;;  %v585_v31 = vld [vmem:[%s2952_s19 + $0x70] sm:$0xff]  ;;  %p2535_p8 = scmp.ne.s32.totalorder %s3254_s27, %s2534_s11 }
  0x91   : > { %2111 = vmatprep.subr.bf16.mxu0 %v2341_v6  ;;  %2134 = vmatpush3.bf16.msra.mxu1 %v2344_v14  ;;  %v593_v30 = vpack.c.bf16 %v584_v28, %v583_v27  ;;  %v586_v32 = vld [vmem:[%s2952_s19 + $0x78] sm:$0xff]  ;;  %v2356_v41 = vld [vmem:[%s3399_s6 + $0x20] ss:$8 sps:$4 sm:$0xff]   ;;  %v2364_v44 = vld [vmem:[%s3399_s6 + $0x44] ss:$8 sps:$4 sm:$0xff]  }
  0x92   : > { %2135 = vmatprep.subr.bf16.mxu1 %v2345_v16  ;;  %v594_v33 = vpack.c.bf16 %v586_v32, %v585_v31  ;;  %v2361_v42 = vld [vmem:[%s3399_s6 + $0x34] ss:$8 sps:$4 sm:$0xff]   ;;  %v2359_v43 = vld [vmem:[%s3399_s6 + $0x30] ss:$8 sps:$4 sm:$0xff]   ;;  %v2362_v45 = vld [vmem:[%s3399_s6 + $0x40] ss:$8 sps:$4 sm:$0xff]   ;;  %s3251_s29 = scalar_lea.hbm %s3446_s20, %s3422_s14  ;;  %p2536_p13 = pnand %p2535_p8, %p3447_p11 }
  0x93   : > { %v2367_v46 = vld [vmem:[%s3399_s6 + $0x54] ss:$8 sps:$4 sm:$0xff]   ;;  %v2365_v47 = vld [vmem:[%s3399_s6 + $0x50] ss:$8 sps:$4 sm:$0xff]   ;;  %v1973_v48 = vld [vmem:[%s3396_s3] ss:$0 sm:$0xff] }
  0x94   : > { %2112 = vmatpush3.bf16.msra.mxu0 %v2341_v6  ;;  %p2537_p1 = pneg %p2536_p13 }
  0x95   : > { %2136 = vmatpush3.bf16.msra.mxu1 %v2345_v16  ;;  %1080 = vmatprep.subr.bf16.mxu0 %v2352_v37 }
  0x96   : > { %2137 = vmatprep.subr.bf16.mxu1 %v2346_v21 }
  0x97   : > { %2114 = vmatmul.mubr.msk.bf16.vlgmr.msra.gmra.mrb[0].mxu0 %vm634_vm0, %v588_v13 }
  0x98   : > { %2117 = vmatprep.mubr.msk.bf16.mxu0 %vm634_vm0, %v589_v15  ;;  %1081 = vmatpush1.bf16.msra.mxu0 %v2350_v36 }
  0x99   : > { %2138 = vmatpush3.bf16.msra.mxu1 %v2346_v21  ;;  %1082 = vmatprep.subr.bf16.mxu0 %v2355_v38 }
  0x9a   : > { %2139 = vmatprep.subr.bf16.mxu1 %v2347_v24 }
  0x9c   : > { %1083 = vmatpush1.bf16.msra.mxu0 %v2353_v39 }
  0x9d   : > { %2140 = vmatpush3.bf16.msra.mxu1 %v2347_v24  ;;  %1084 = vmatprep.subr.bf16.mxu0 %v2358_v40 }
  0x9e   : > { %2141 = vmatprep.subr.bf16.mxu1 %v2348_v34 }
  0x9f   : > { %2118 = vmatmul.mubr.msk.bf16.gmra.mrb[4].mxu0 %vm634_vm0, %v590_v22 }
  0xa0   : > { %2121 = vmatprep.mubr.msk.bf16.mxu0 %vm634_vm0, %v591_v23  ;;  %1085 = vmatpush1.bf16.msra.mxu0 %v2356_v41  ;;  %v2370_v41 = vld [vmem:[%s3399_s6 + $0x64] ss:$8 sps:$4 sm:$0xff]  }
  0xa1   : > { %2142 = vmatpush3.bf16.msra.mxu1 %v2348_v34  ;;  %1086 = vmatprep.subr.bf16.mxu0 %v2361_v42  ;;  %v2368_v42 = vld [vmem:[%s3399_s6 + $0x60] ss:$8 sps:$4 sm:$0xff]  }
  0xa2   : > { %2143 = vmatprep.subr.bf16.mxu1 %v2349_v35 }
  0xa4   : > { %1087 = vmatpush1.bf16.msra.mxu0 %v2359_v43  ;;  %v2373_v43 = vld [vmem:[%s3399_s6 + $0x74] ss:$8 sps:$4 sm:$0xff]  }
  0xa5   : > { %2144 = vmatpush3.bf16.msra.mxu1 %v2349_v35  ;;  %1088 = vmatprep.subr.bf16.mxu0 %v2364_v44  ;;  %v2371_v44 = vld [vmem:[%s3399_s6 + $0x70] ss:$8 sps:$4 sm:$0xff]  }
  0xa7   : > { %2122 = vmatmul.mubr.msk.bf16.gmra.mrb[8].mxu0 %vm634_vm0, %v592_v29 }
  0xa8   : > { %2125 = vmatprep.mubr.msk.bf16.mxu0 %vm634_vm0, %v593_v30  ;;  %1089 = vmatpush1.bf16.msra.mxu0 %v2362_v45  ;;  %v2676_v45 = vmov 0  }
  0xa9   : > { %1090 = vmatprep.subr.bf16.mxu0 %v2367_v46  ;;  %v1986_v46 = vld [vmem:[%s3398_s5] ss:$0 sm:$0xff] }
  0xac   : > { %1091 = vmatpush1.bf16.msra.mxu0 %v2365_v47 }
  0xad   : > { %1092 = vmatprep.subr.bf16.mxu0 %v2370_v41  ;;  %v2376_v41 = vld [vmem:[#allocation7 + $0x10] sm:$0xff]  }
  0xaf   : > { %2126 = vmatmul.mubr.msk.bf16.gmra.mrb[12].mxu0 %vm634_vm0, %v594_v33 }
  0xb0   : > { %1093 = vmatpush1.bf16.msra.mxu0 %v2368_v42  ;;  %1112 = vmatprep.mubr.bf16.mxu0 %v2676_v45  ;;  %v2377_v42 = vld [vmem:[#allocation7 + $0x18] sm:$0xff]  }
  0xb1   : > { %1094 = vmatprep.subr.bf16.mxu0 %v2373_v43  ;;  %v2378_v43 = vld [vmem:[#allocation7 + $0x20] sm:$0xff]  }
  0xb4   : > { %1095 = vmatpush1.bf16.msra.mxu0 %v2371_v44  ;;  %v2379_v44 = vld [vmem:[#allocation7 + $0x28] sm:$0xff]  }
 0x16a   : > { %v2115_v49 = vpop.f32.mrb[0].mxu0 }
 0x16b   : > { %v702_v50 = vadd.f32 %v2115_v49, %v1973_v48  ;;  %v693_v51 = vpop.f32.mrb[1].mxu0 }
 0x16c   : > { %v694_v52 = vadd.f32 %v1973_v48, %v693_v51  ;;  %v2116_v53 = vpop.f32.mrb[2].mxu0 }
 0x16d   : > { %v705_v54 = vadd.f32 %v2116_v53, %v1973_v48  ;;  %v696_v55 = vpop.f32.mrb[3].mxu0  ;;  %v758_v57 = vmax.f32 %v702_v50, 0.0 }
 0x16e   : > { %v697_v56 = vadd.f32 %v1973_v48, %v696_v55  ;;  %v756_v59 = vmax.f32 %v694_v52, 0.0 }
 0x16f   : > { %v759_v58 = vmax.f32 %v705_v54, 0.0 }
 0x170   : > { %v757_v60 = vmax.f32 %v697_v56, 0.0 }
 0x171   : > { %v773_v61 = vpack.c.bf16 %v759_v58, %v758_v57 }
 0x172   : > { %v2119_v62 = vpop.f32.mrb[4].mxu0  ;;  %v772_v63 = vpack.c.bf16 %v757_v60, %v756_v59 }
 0x173   : > { %v718_v0 = vadd.f32 %v2119_v62, %v1973_v48  ;;  %v709_v1 = vpop.f32.mrb[5].mxu0 }
 0x174   : > { %v710_v2 = vadd.f32 %v1973_v48, %v709_v1  ;;  %2145 = vmatprep.mubr.bf16.mxu1 %v772_v63  ;;  %v2120_v3 = vpop.f32.mrb[6].mxu0 }
 0x175   : > { %v762_v4 = vmax.f32 %v718_v0, 0.0  ;;  %v721_v5 = vadd.f32 %v2120_v3, %v1973_v48  ;;  %2146 = vmatmul.mubr.bf16.vlgmr.msra.gmra.mrb[0].mxu1 %v773_v61  ;;  %v712_v6 = vpop.f32.mrb[7].mxu0 }
 0x176   : > { %v760_v7 = vmax.f32 %v710_v2, 0.0  ;;  %v713_v8 = vadd.f32 %v1973_v48, %v712_v6 }
 0x177   : > { %v763_v9 = vmax.f32 %v721_v5, 0.0 }
 0x178   : > { %v761_v10 = vmax.f32 %v713_v8, 0.0 }
 0x179   : > { %v775_v11 = vpack.c.bf16 %v763_v9, %v762_v4 }
 0x17a   : > { %v774_v12 = vpack.c.bf16 %v761_v10, %v760_v7  ;;  %v2123_v13 = vpop.f32.mrb[8].mxu0 }
 0x17b   : > { %v734_v14 = vadd.f32 %v2123_v13, %v1973_v48  ;;  %v725_v15 = vpop.f32.mrb[9].mxu0 }
 0x17c   : > { %2149 = vmatprep.mubr.bf16.mxu1 %v774_v12  ;;  %v726_v16 = vadd.f32 %v1973_v48, %v725_v15  ;;  %v2124_v17 = vpop.f32.mrb[10].mxu0 }
 0x17d   : > { %2150 = vmatmul.mubr.bf16.gmra.mrb[4].mxu1 %v775_v11  ;;  %v766_v18 = vmax.f32 %v734_v14, 0.0  ;;  %v737_v19 = vadd.f32 %v2124_v17, %v1973_v48  ;;  %v728_v20 = vpop.f32.mrb[11].mxu0 }
 0x17e   : > { %v764_v21 = vmax.f32 %v726_v16, 0.0  ;;  %v729_v22 = vadd.f32 %v1973_v48, %v728_v20 }
 0x17f   : > { %v767_v23 = vmax.f32 %v737_v19, 0.0 }
 0x180   : > { %v765_v24 = vmax.f32 %v729_v22, 0.0 }
 0x181   : > { %v777_v25 = vpack.c.bf16 %v767_v23, %v766_v18 }
 0x182   : > { %v776_v26 = vpack.c.bf16 %v765_v24, %v764_v21  ;;  %v2127_v27 = vpop.f32.mrb[12].mxu0 }
 0x183   : > { %v750_v28 = vadd.f32 %v2127_v27, %v1973_v48  ;;  %v741_v29 = vpop.f32.mrb[13].mxu0 }
 0x184   : > { %2153 = vmatprep.mubr.bf16.mxu1 %v776_v26  ;;  %v742_v30 = vadd.f32 %v1973_v48, %v741_v29  ;;  %v2128_v31 = vpop.f32.mrb[14].mxu0 }
 0x185   : > { %2154 = vmatmul.mubr.bf16.gmra.mrb[8].mxu1 %v777_v25  ;;  %v770_v32 = vmax.f32 %v750_v28, 0.0  ;;  %v753_v33 = vadd.f32 %v2128_v31, %v1973_v48  ;;  %v744_v34 = vpop.f32.mrb[15].mxu0 }
 0x186   : > { %v768_v35 = vmax.f32 %v742_v30, 0.0  ;;  %v745_v36 = vadd.f32 %v1973_v48, %v744_v34 }
 0x187   : > { %v771_v37 = vmax.f32 %v753_v33, 0.0 }
 0x188   : > { %v769_v38 = vmax.f32 %v745_v36, 0.0 }
 0x189   : > { %v779_v39 = vpack.c.bf16 %v771_v37, %v770_v32 }
 0x18a   : > { %v778_v40 = vpack.c.bf16 %v769_v38, %v768_v35 }
 0x18c   : > { %2157 = vmatprep.mubr.bf16.mxu1 %v778_v40  ;;  %v2375_v40 = vld [vmem:[#allocation7 + $0x8] sm:$0xff]  }
 0x18d   : > { %2158 = vmatmul.mubr.bf16.gmra.mrb[12].mxu1 %v779_v39  ;;  %v2374_v39 = vld [vmem:[#allocation7] sm:$0xff]  }
 0x18e   : > { %2161 = vmatprep.subr.bf16.mxu1 %v2374_v39 }
 0x18f   : > { %2162 = vmatpush3.bf16.msra.mxu1 %v2374_v39  ;;  %v1195_v39 = vld [vmem:[%s3102_s15 + $0x10] sm:$0xff] }
 0x190   : > { %2163 = vmatprep.subr.bf16.mxu1 %v2375_v40 }
 0x193   : > { %2164 = vmatpush3.bf16.msra.mxu1 %v2375_v40 }
 0x194   : > { %2165 = vmatprep.subr.bf16.mxu1 %v2376_v41 }
 0x197   : > { %2166 = vmatpush3.bf16.msra.mxu1 %v2376_v41 }
 0x198   : > { %2167 = vmatprep.subr.bf16.mxu1 %v2377_v42 }
 0x19b   : > { %2168 = vmatpush3.bf16.msra.mxu1 %v2377_v42 }
 0x19c   : > { %2169 = vmatprep.subr.bf16.mxu1 %v2378_v43 }
 0x19f   : > { %2170 = vmatpush3.bf16.msra.mxu1 %v2378_v43 }
 0x1a0   : > { %2171 = vmatprep.subr.bf16.mxu1 %v2379_v44 }
 0x1a3   : > { %2172 = vmatpush3.bf16.msra.mxu1 %v2379_v44 }
 0x248   : > { %v2147_v47 = vpop.f32.mrb[0].mxu1 }
 0x249   : > { %v894_v48 = vadd.f32 %v2147_v47, %v1986_v46  ;;  %v885_v49 = vpop.f32.mrb[1].mxu1  ;;  %v3040_v47 = vld [vmem:[#allocation8] sm:$0xff]  }
 0x24a   : > { %v886_v50 = vadd.f32 %v1986_v46, %v885_v49  ;;  %v2148_v51 = vpop.f32.mrb[2].mxu1  ;;  %2193 = vmatprep.subr.bf16.mxu0 %v3040_v47  ;;  %v3048_v49 = vld [vmem:[#allocation8 + $0x10] sm:$0xff]  }
 0x24b   : > { %v897_v52 = vadd.f32 %v2148_v51, %v1986_v46  ;;  %v888_v53 = vpop.f32.mrb[3].mxu1  ;;  %v950_v55 = vmax.f32 %v894_v48, 0.0  ;;  %v3042_v48 = vld [vmem:[#allocation8 + $0x8] sm:$0xff]   ;;  %v3056_v51 = vld [vmem:[#allocation8 + $0x20] sm:$0xff]  }
 0x24c   : > { %v889_v54 = vadd.f32 %v1986_v46, %v888_v53  ;;  %v948_v57 = vmax.f32 %v886_v50, 0.0  ;;  %v3052_v50 = vld [vmem:[#allocation8 + $0x18] sm:$0xff]   ;;  %v990_v53 = vlaneseq }
 0x24d   : > { %v951_v56 = vmax.f32 %v897_v52, 0.0  ;;  %v3060_v52 = vld [vmem:[#allocation8 + $0x28] sm:$0xff]  }
 0x24e   : > { %v949_v58 = vmax.f32 %v889_v54, 0.0  ;;  %v991_v54 = vshrl.u32 %v990_v53, 7 }
 0x24f   : > { %v965_v59 = vpack.c.bf16 %v951_v56, %v950_v55  ;;  %v988_v56 = vld [vmem:[%s3400_s7] sm:$0x3] }
 0x250   : > { %v964_v60 = vpack.c.bf16 %v949_v58, %v948_v57  ;;  %v2151_v61 = vpop.f32.mrb[4].mxu1  ;;  %v992_v55 = vsub.s32 0, %v991_v54  ;;  %v996_v57 = vsub.s32 1, %v991_v54 }
 0x251   : > { %v910_v62 = vadd.f32 %v2151_v61, %v1986_v46  ;;  %v901_v63 = vpop.f32.mrb[5].mxu1 }
 0x252   : > { %v902_v0 = vadd.f32 %v1986_v46, %v901_v63  ;;  %1113 = vmatmul.mubr.bf16.vlgmr.msra.gmra.mrb[16].mxu0 %v964_v60  ;;  %v2152_v1 = vpop.f32.mrb[6].mxu1  ;;  %v3072_v58 = vrot.slane %v988_v56, %v992_v55 }
 0x253   : > { %v954_v2 = vmax.f32 %v910_v62, 0.0  ;;  %v913_v3 = vadd.f32 %v2152_v1, %v1986_v46  ;;  %v904_v4 = vpop.f32.mrb[7].mxu1  ;;  %1122 = vmatprep.mubr.bf16.mxu0 %v2676_v45  ;;  %2194 = vmatpush3.bf16.msra.mxu0 %v3040_v47 }
 0x254   : > { %v952_v5 = vmax.f32 %v902_v0, 0.0  ;;  %v905_v6 = vadd.f32 %v1986_v46, %v904_v4  ;;  %2195 = vmatprep.subr.bf16.mxu0 %v3042_v48 }
 0x255   : > { %v955_v7 = vmax.f32 %v913_v3, 0.0 }
 0x256   : > { %v953_v8 = vmax.f32 %v905_v6, 0.0 }
 0x257   : > { %v967_v9 = vpack.c.bf16 %v955_v7, %v954_v2  ;;  %2196 = vmatpush3.bf16.msra.mxu0 %v3042_v48 }
 0x258   : > { %v966_v10 = vpack.c.bf16 %v953_v8, %v952_v5  ;;  %v2155_v11 = vpop.f32.mrb[8].mxu1  ;;  %2197 = vmatprep.subr.bf16.mxu0 %v3048_v49 }
 0x259   : > { %v926_v12 = vadd.f32 %v2155_v11, %v1986_v46  ;;  %v917_v13 = vpop.f32.mrb[9].mxu1 }
 0x25a   : > { %1123 = vmatmul.mubr.bf16.gmra.mrb[20].mxu0 %v965_v59  ;;  %v918_v14 = vadd.f32 %v1986_v46, %v917_v13  ;;  %v2156_v15 = vpop.f32.mrb[10].mxu1  ;;  %v3074_v59 = vrot.slane %v988_v56, %v996_v57 }
 0x25b   : > { %v958_v16 = vmax.f32 %v926_v12, 0.0  ;;  %1132 = vmatprep.mubr.bf16.mxu0 %v2676_v45  ;;  %v929_v17 = vadd.f32 %v2156_v15, %v1986_v46  ;;  %v920_v18 = vpop.f32.mrb[11].mxu1  ;;  %2198 = vmatpush3.bf16.msra.mxu0 %v3048_v49 }
 0x25c   : > { %v956_v19 = vmax.f32 %v918_v14, 0.0  ;;  %v921_v20 = vadd.f32 %v1986_v46, %v920_v18  ;;  %2199 = vmatprep.subr.bf16.mxu0 %v3052_v50 }
 0x25d   : > { %v959_v21 = vmax.f32 %v929_v17, 0.0 }
 0x25e   : > { %v957_v22 = vmax.f32 %v921_v20, 0.0 }
 0x25f   : > { %v969_v23 = vpack.c.bf16 %v959_v21, %v958_v16  ;;  %2200 = vmatpush3.bf16.msra.mxu0 %v3052_v50  ;;  %v1193_v21 = vld [vmem:[%s3102_s15] sm:$0xff] }
 0x260   : > { %v968_v24 = vpack.c.bf16 %v957_v22, %v956_v19  ;;  %v2159_v25 = vpop.f32.mrb[12].mxu1  ;;  %2201 = vmatprep.subr.bf16.mxu0 %v3056_v51 }
 0x261   : > { %v942_v26 = vadd.f32 %v2159_v25, %v1986_v46  ;;  %v933_v27 = vpop.f32.mrb[13].mxu1 }
 0x262   : > { %1133 = vmatmul.mubr.bf16.gmra.mrb[24].mxu0 %v966_v10  ;;  %v934_v28 = vadd.f32 %v1986_v46, %v933_v27  ;;  %v2160_v29 = vpop.f32.mrb[14].mxu1  ;;  %v1194_v27 = vld [vmem:[%s3102_s15 + $0x8] sm:$0xff] }
 0x263   : > { %1142 = vmatprep.mubr.bf16.mxu0 %v2676_v45  ;;  %v962_v30 = vmax.f32 %v942_v26, 0.0  ;;  %v945_v31 = vadd.f32 %v2160_v29, %v1986_v46  ;;  %v936_v32 = vpop.f32.mrb[15].mxu1  ;;  %2202 = vmatpush3.bf16.msra.mxu0 %v3056_v51 }
 0x264   : > { %v960_v33 = vmax.f32 %v934_v28, 0.0  ;;  %v937_v34 = vadd.f32 %v1986_v46, %v936_v32  ;;  %v2381_v46 = vld [vmem:[#allocation7 + $0x38] sm:$0xff]   ;;  %2203 = vmatprep.subr.bf16.mxu0 %v3060_v52 }
 0x265   : > { %v963_v35 = vmax.f32 %v945_v31, 0.0 }
 0x266   : > { %v961_v36 = vmax.f32 %v937_v34, 0.0 }
 0x267   : > { %v971_v37 = vpack.c.bf16 %v963_v35, %v962_v30  ;;  %2204 = vmatpush3.bf16.msra.mxu0 %v3060_v52 }
 0x268   : > { %v970_v38 = vpack.c.bf16 %v961_v36, %v960_v33 }
 0x26a   : > { %1143 = vmatmul.mubr.bf16.gmra.mrb[28].mxu0 %v967_v9 }
 0x26b   : > { %1152 = vmatprep.mubr.bf16.mxu0 %v2676_v45 }
 0x272   : > { %1153 = vmatmul.mubr.bf16.gmra.mrb[32].mxu0 %v968_v24 }
 0x273   : > { %1162 = vmatprep.mubr.bf16.mxu0 %v2676_v45 }
 0x27a   : > { %1163 = vmatmul.mubr.bf16.gmra.mrb[36].mxu0 %v969_v23 }
 0x27b   : > { %1172 = vmatprep.mubr.bf16.mxu0 %v2676_v45 }
 0x282   : > { %1173 = vmatmul.mubr.bf16.gmra.mrb[40].mxu0 %v970_v38 }
 0x283   : > { %1182 = vmatprep.mubr.bf16.mxu0 %v2676_v45  ;;  %v2380_v45 = vld [vmem:[#allocation7 + $0x30] sm:$0xff]  }
 0x284   : > { %2173 = vmatprep.subr.bf16.mxu1 %v2380_v45 }
 0x285   : > { %2174 = vmatpush3.bf16.msra.mxu1 %v2380_v45 }
 0x286   : > { %2175 = vmatprep.subr.bf16.mxu1 %v2381_v46 }
 0x289   : > { %2176 = vmatpush3.bf16.msra.mxu1 %v2381_v46  ;;  %v1196_v46 = vld [vmem:[%s3102_s15 + $0x18] sm:$0xff] }
 0x28a   : > { %1183 = vmatmul.mubr.bf16.gmra.mrb[44].mxu0 %v971_v37  ;;  %2225 = vmatprep.subr.bf16.mxu1 %v3040_v47 }
 0x325   : > { %v1114_v60 = vpop.f32.mrb[16].mxu0 }
 0x326   : > { %v1115_v61 = vadd.f32 %v1114_v60, %v3072_v58  ;;  %v1116_v62 = vpop.f32.mrb[17].mxu0 }
 0x327   : > { %v1117_v63 = vadd.f32 %v1116_v62, %v3074_v59  ;;  %v1118_v0 = vpop.f32.mrb[18].mxu0 }
 0x328   : > { %1657 = vst [vmem:[%s3078_s21] sm:$0xff] %v1115_v61  ;;  %v1119_v1 = vadd.f32 %v1118_v0, %v3072_v58  ;;  %v1120_v2 = vpop.f32.mrb[19].mxu0 }
 0x329   : > { %v1209_v3 = vmul.f32 0.5, %v1117_v63  ;;  %1658 = vst [vmem:[%s3078_s21 + $0x8] sm:$0xff] %v1117_v63  ;;  %v1121_v4 = vadd.f32 %v1120_v2, %v3074_v59 }
 0x32a   : > { %1659 = vst [vmem:[%s3078_s21 + $0x10] sm:$0xff] %v1119_v1 }
 0x32b   : > { %v1225_v5 = vmul.f32 1.442695, %v1209_v3  ;;  %v1210_v6 = vmul.f32 0.5, %v1121_v4  ;;  %1660 = vst [vmem:[%s3078_s21 + $0x18] sm:$0xff] %v1121_v4 }
 0x32d   : > { %2390 = vpow2.f32 %v1225_v5  ;;  %v1227_v7 = vmul.f32 1.442695, %v1210_v6  ;;  %v1124_v8 = vpop.f32.mrb[20].mxu0  ;;  %v1197_v6 = vld [vmem:[%s3102_s15 + $0x20] sm:$0xff] }
 0x32e   : > { %v3087_v9 = vadd.f32 %v1124_v8, %v3072_v58  ;;  %v1126_v10 = vpop.f32.mrb[21].mxu0 }
 0x32f   : > { %2392 = vpow2.f32 %v1227_v7  ;;  %v1127_v11 = vadd.f32 %v1126_v10, %v3074_v59  ;;  %v1128_v12 = vpop.f32.mrb[22].mxu0 }
 0x330   : > { %1661 = vst [vmem:[%s3078_s21 + $0x20] sm:$0xff] %v3087_v9  ;;  %v3093_v13 = vadd.f32 %v1128_v12, %v3072_v58  ;;  %v1130_v14 = vpop.f32.mrb[23].mxu0 }
 0x331   : > { %v1211_v15 = vmul.f32 0.5, %v1127_v11  ;;  %1662 = vst [vmem:[%s3078_s21 + $0x28] sm:$0xff] %v1127_v11  ;;  %v1131_v16 = vadd.f32 %v1130_v14, %v3074_v59  ;;  %v1198_v14 = vld [vmem:[%s3102_s15 + $0x28] sm:$0xff] }
 0x332   : > { %1663 = vst [vmem:[%s3078_s21 + $0x30] sm:$0xff] %v3093_v13 }
 0x333   : > { %v1229_v17 = vmul.f32 1.442695, %v1211_v15  ;;  %v1212_v18 = vmul.f32 0.5, %v1131_v16  ;;  %1664 = vst [vmem:[%s3078_s21 + $0x38] sm:$0xff] %v1131_v16 }
 0x335   : > { %2394 = vpow2.f32 %v1229_v17  ;;  %v1231_v19 = vmul.f32 1.442695, %v1212_v18  ;;  %v1134_v20 = vpop.f32.mrb[24].mxu0 }
 0x336   : > { %v3109_v22 = vadd.f32 %v1134_v20, %v3072_v58  ;;  %v1136_v23 = vpop.f32.mrb[25].mxu0 }
 0x337   : > { %v2391_v24 = vpop.eup %2390  ;;  %2396 = vpow2.f32 %v1231_v19  ;;  %v1137_v25 = vadd.f32 %v1136_v23, %v3074_v59  ;;  %v1138_v26 = vpop.f32.mrb[26].mxu0 }
 0x338   : > { %1665 = vst [vmem:[%s3078_s21 + $0x40] sm:$0xff] %v3109_v22  ;;  %v3117_v28 = vadd.f32 %v1138_v26, %v3072_v58  ;;  %v1140_v29 = vpop.f32.mrb[27].mxu0  ;;  %v1257_v30 = vmul.f32 %v2391_v24, %v1193_v21 }
 0x339   : > { %v2393_v31 = vpop.eup %2392  ;;  %v1213_v32 = vmul.f32 0.5, %v1137_v25  ;;  %1666 = vst [vmem:[%s3078_s21 + $0x48] sm:$0xff] %v1137_v25  ;;  %v1141_v33 = vadd.f32 %v1140_v29, %v3074_v59 }
 0x33a   : > { %1667 = vst [vmem:[%s3078_s21 + $0x50] sm:$0xff] %v3117_v28  ;;  %v1258_v34 = vmul.f32 %v2393_v31, %v1194_v27  ;;  %v1273_v35 = vadd.f32 %v1257_v30, %v1115_v61 }
 0x33b   : > { %v1233_v36 = vmul.f32 1.442695, %v1213_v32  ;;  %v1214_v37 = vmul.f32 0.5, %v1141_v33  ;;  %1668 = vst [vmem:[%s3078_s21 + $0x58] sm:$0xff] %v1141_v33  ;;  %v1200_v33 = vld [vmem:[%s3102_s15 + $0x38] sm:$0xff] }
 0x33c   : > { %v1274_v38 = vadd.f32 %v1258_v34, %v1119_v1  ;;  %1689 = vst [vmem:[%s3126_s25] sm:$0xff] %v1273_v35 }
 0x33d   : > { %2398 = vpow2.f32 %v1233_v36  ;;  %v1235_v40 = vmul.f32 1.442695, %v1214_v37  ;;  %v1144_v41 = vpop.f32.mrb[28].mxu0 }
 0x33e   : > { %v3131_v42 = vadd.f32 %v1144_v41, %v3072_v58  ;;  %v1146_v43 = vpop.f32.mrb[29].mxu0  ;;  %v1289_v44 = vpack.c.bf16 %v1274_v38, %v1273_v35  ;;  %1690 = vst [vmem:[%s3126_s25 + $0x8] sm:$0xff] %v1274_v38 }
 0x33f   : > { %v2395_v45 = vpop.eup %2394  ;;  %2400 = vpow2.f32 %v1235_v40  ;;  %v1147_v53 = vadd.f32 %v1146_v43, %v3074_v59  ;;  %v1148_v54 = vpop.f32.mrb[30].mxu0 }
 0x340   : > { %v1259_v55 = vmul.f32 %v2395_v45, %v1195_v39  ;;  %1669 = vst [vmem:[%s3078_s21 + $0x60] sm:$0xff] %v3131_v42  ;;  %v3139_v56 = vadd.f32 %v1148_v54, %v3072_v58  ;;  %v1150_v57 = vpop.f32.mrb[31].mxu0  ;;  %2177 = vmatprep.mubr.bf16.mxu1 %v1289_v44 }
 0x341   : > { %v2397_v60 = vpop.eup %2396  ;;  %v1215_v61 = vmul.f32 0.5, %v1147_v53  ;;  %1670 = vst [vmem:[%s3078_s21 + $0x68] sm:$0xff] %v1147_v53  ;;  %v1151_v62 = vadd.f32 %v1150_v57, %v3074_v59 }
 0x342   : > { %v1260_v63 = vmul.f32 %v2397_v60, %v1196_v46  ;;  %1671 = vst [vmem:[%s3078_s21 + $0x70] sm:$0xff] %v3139_v56  ;;  %v1275_v0 = vadd.f32 %v1259_v55, %v3087_v9  ;;  %v1202_v60 = vld [vmem:[%s3102_s15 + $0x48] sm:$0xff] }
 0x343   : > { %v1237_v1 = vmul.f32 1.442695, %v1215_v61  ;;  %v1216_v2 = vmul.f32 0.5, %v1151_v62  ;;  %1672 = vst [vmem:[%s3078_s21 + $0x78] sm:$0xff] %v1151_v62 }
 0x344   : > { %v1276_v3 = vadd.f32 %v1260_v63, %v3093_v13  ;;  %1691 = vst [vmem:[%s3126_s25 + $0x10] sm:$0xff] %v1275_v0 }
 0x345   : > { %2402 = vpow2.f32 %v1237_v1  ;;  %v1239_v4 = vmul.f32 1.442695, %v1216_v2  ;;  %v1154_v5 = vpop.f32.mrb[32].mxu0 }
 0x346   : > { %v3151_v7 = vadd.f32 %v1154_v5, %v3072_v58  ;;  %v1156_v8 = vpop.f32.mrb[33].mxu0  ;;  %v1290_v10 = vpack.c.bf16 %v1276_v3, %v1275_v0  ;;  %1692 = vst [vmem:[%s3126_s25 + $0x18] sm:$0xff] %v1276_v3 }
 0x347   : > { %v2399_v9 = vpop.eup %2398  ;;  %2404 = vpow2.f32 %v1239_v4  ;;  %v1157_v11 = vadd.f32 %v1156_v8, %v3074_v59  ;;  %v1158_v12 = vpop.f32.mrb[34].mxu0 }
 0x348   : > { %1673 = vst [vmem:[%s3078_s21 + $0x80] sm:$0xff] %v3151_v7  ;;  %v3159_v13 = vadd.f32 %v1158_v12, %v3072_v58  ;;  %v1160_v15 = vpop.f32.mrb[35].mxu0  ;;  %2178 = vmatmul.mubr.bf16.vlgmr.msra.gmra.mrb[16].mxu1 %v1290_v10  ;;  %v1261_v16 = vmul.f32 %v2399_v9, %v1197_v6  ;;  %v1203_v9 = vld [vmem:[%s3102_s15 + $0x50] sm:$0xff] }
 0x349   : > { %v2401_v17 = vpop.eup %2400  ;;  %v1217_v18 = vmul.f32 0.5, %v1157_v11  ;;  %1674 = vst [vmem:[%s3078_s21 + $0x88] sm:$0xff] %v1157_v11  ;;  %v1161_v19 = vadd.f32 %v1160_v15, %v3074_v59  ;;  %2233 = vmatpush3.bf16.msra.mxu1 %v3040_v47  ;;  %v1199_v47 = vld [vmem:[%s3102_s15 + $0x30] sm:$0xff]  ;;  %v1204_v15 = vld [vmem:[%s3102_s15 + $0x58] sm:$0xff] }
 0x34a   : > { %1675 = vst [vmem:[%s3078_s21 + $0x90] sm:$0xff] %v3159_v13  ;;  %v1262_v20 = vmul.f32 %v2401_v17, %v1198_v14  ;;  %v1277_v21 = vadd.f32 %v1261_v16, %v3109_v22  ;;  %2226 = vmatprep.subr.bf16.mxu1 %v3042_v48 }
 0x34b   : > { %v1241_v23 = vmul.f32 1.442695, %v1217_v18  ;;  %v1218_v24 = vmul.f32 0.5, %v1161_v19  ;;  %1676 = vst [vmem:[%s3078_s21 + $0x98] sm:$0xff] %v1161_v19 }
 0x34c   : > { %v1278_v25 = vadd.f32 %v1262_v20, %v3117_v28  ;;  %1693 = vst [vmem:[%s3126_s25 + $0x20] sm:$0xff] %v1277_v21 }
 0x34d   : > { %2406 = vpow2.f32 %v1241_v23  ;;  %v1243_v26 = vmul.f32 1.442695, %v1218_v24  ;;  %v1164_v27 = vpop.f32.mrb[36].mxu0  ;;  %2234 = vmatpush3.bf16.msra.mxu1 %v3042_v48 }
 0x34e   : > { %v3174_v29 = vadd.f32 %v1164_v27, %v3072_v58  ;;  %v1166_v22 = vpop.f32.mrb[37].mxu0  ;;  %v1291_v30 = vpack.c.bf16 %v1278_v25, %v1277_v21  ;;  %1694 = vst [vmem:[%s3126_s25 + $0x28] sm:$0xff] %v1278_v25  ;;  %2227 = vmatprep.subr.bf16.mxu1 %v3048_v49  ;;  %v1205_v27 = vld [vmem:[%s3102_s15 + $0x60] sm:$0xff] }
 0x34f   : > { %v2403_v28 = vpop.eup %2402  ;;  %2408 = vpow2.f32 %v1243_v26  ;;  %v1167_v31 = vadd.f32 %v1166_v22, %v3074_v59  ;;  %v1168_v32 = vpop.f32.mrb[38].mxu0  ;;  %v1206_v22 = vld [vmem:[%s3102_s15 + $0x68] sm:$0xff] }
 0x350   : > { %1677 = vst [vmem:[%s3078_s21 + $0xa0] sm:$0xff] %v3174_v29  ;;  %v3183_v48 = vadd.f32 %v1168_v32, %v3072_v58  ;;  %v1170_v34 = vpop.f32.mrb[39].mxu0  ;;  %2181 = vmatprep.mubr.bf16.mxu1 %v1291_v30  ;;  %v1263_v35 = vmul.f32 %v2403_v28, %v1199_v47 }
 0x351   : > { %v2405_v36 = vpop.eup %2404  ;;  %v1219_v37 = vmul.f32 0.5, %v1167_v31  ;;  %1678 = vst [vmem:[%s3078_s21 + $0xa8] sm:$0xff] %v1167_v31  ;;  %v1171_v38 = vadd.f32 %v1170_v34, %v3074_v59  ;;  %2235 = vmatpush3.bf16.msra.mxu1 %v3048_v49  ;;  %v1201_v49 = vld [vmem:[%s3102_s15 + $0x40] sm:$0xff] }
 0x352   : > { %1679 = vst [vmem:[%s3078_s21 + $0xb0] sm:$0xff] %v3183_v48  ;;  %v1264_v39 = vmul.f32 %v2405_v36, %v1200_v33  ;;  %v1279_v40 = vadd.f32 %v1263_v35, %v3131_v42  ;;  %2228 = vmatprep.subr.bf16.mxu1 %v3052_v50  ;;  %v1207_v33 = vld [vmem:[%s3102_s15 + $0x70] sm:$0xff]  ;;  %v1208_v35 = vld [vmem:[%s3102_s15 + $0x78] sm:$0xff]  ;;  %s2538_s15 = sshll.u32 %s2677_s28, 4  ;;  %s2539_s15 = int_to_ptr.vmem [resolvable:$false] %s2538_s15 }
 0x353   : > { %v1245_v41 = vmul.f32 1.442695, %v1219_v37  ;;  %v1220_v43 = vmul.f32 0.5, %v1171_v38  ;;  %1680 = vst [vmem:[%s3078_s21 + $0xb8] sm:$0xff] %v1171_v38  ;;  %s2540_s19 = scalar_lea.vmem %s2539_s15, 4096  ;;  %p2541_p6 = scmp.lt.s32.totalorder %s3254_s27, %s2539_s15 }
 0x354   : > { %v1280_v44 = vadd.f32 %v1264_v39, %v3139_v56  ;;  %1695 = vst [vmem:[%s3126_s25 + $0x30] sm:$0xff] %v1279_v40  ;;  %p2542_p9 = scmp.lt.s32.totalorder %s2540_s19, %s2534_s11 }
 0x355   : > { %2410 = vpow2.f32 %v1245_v41  ;;  %v1247_v45 = vmul.f32 1.442695, %v1220_v43  ;;  %v1174_v46 = vpop.f32.mrb[40].mxu0  ;;  %2236 = vmatpush3.bf16.msra.mxu1 %v3052_v50  ;;  %v2388_v43 = vld [vmem:[#allocation8 + $0x30] sm:$0xff]  }
 0x356   : > { %v3198_v53 = vadd.f32 %v1174_v46, %v3072_v58  ;;  %v1176_v42 = vpop.f32.mrb[41].mxu0  ;;  %v1292_v54 = vpack.c.bf16 %v1280_v44, %v1279_v40  ;;  %1696 = vst [vmem:[%s3126_s25 + $0x38] sm:$0xff] %v1280_v44  ;;  %2229 = vmatprep.subr.bf16.mxu1 %v3056_v51  ;;  %2205 = vmatprep.subr.bf16.mxu0 %v2388_v43  ;;  %v2389_v44 = vld [vmem:[#allocation8 + $0x38] sm:$0xff]   ;;  %p2543_p5 = por %p2542_p9, %p2541_p6 }
 0x357   : > { %v2407_v55 = vpop.eup %2406  ;;  %2412 = vpow2.f32 %v1247_v45  ;;  %v1177_v56 = vadd.f32 %v1176_v42, %v3074_v59  ;;  %v1178_v57 = vpop.f32.mrb[42].mxu0  ;;  %2206 = vmatpush3.bf16.msra.mxu0 %v2388_v43  ;;  %v2011_v45 = vld [vmem:[%s3402_s9] ss:$0 sm:$0xff] }
 0x358   : > { %1681 = vst [vmem:[%s3078_s21 + $0xc0] sm:$0xff] %v3198_v53  ;;  %v1179_v50 = vadd.f32 %v1178_v57, %v3072_v58  ;;  %v1180_v61 = vpop.f32.mrb[43].mxu0  ;;  %2182 = vmatmul.mubr.bf16.gmra.mrb[20].mxu1 %v1292_v54  ;;  %v1265_v62 = vmul.f32 %v2407_v55, %v1201_v49  ;;  %2207 = vmatprep.subr.bf16.mxu0 %v2389_v44  ;;  %p2544_p0 = pnand %p2543_p5, %p2537_p1 }
 0x359   : > { %v2409_v63 = vpop.eup %2408  ;;  %v1221_v0 = vmul.f32 0.5, %v1177_v56  ;;  %1682 = vst [vmem:[%s3078_s21 + $0xc8] sm:$0xff] %v1177_v56  ;;  %v1181_v1 = vadd.f32 %v1180_v61, %v3074_v59  ;;  %2237 = vmatpush3.bf16.msra.mxu1 %v3056_v51 }
 0x35a   : > { %1683 = vst [vmem:[%s3078_s21 + $0xd0] sm:$0xff] %v1179_v50  ;;  %v1266_v2 = vmul.f32 %v2409_v63, %v1202_v60  ;;  %v1281_v3 = vadd.f32 %v1265_v62, %v3151_v7  ;;  %2230 = vmatprep.subr.bf16.mxu1 %v3060_v52 }
 0x35b   : > { %v1249_v4 = vmul.f32 1.442695, %v1221_v0  ;;  %v1222_v5 = vmul.f32 0.5, %v1181_v1  ;;  %1684 = vst [vmem:[%s3078_s21 + $0xd8] sm:$0xff] %v1181_v1  ;;  %2208 = vmatpush3.bf16.msra.mxu0 %v2389_v44 }
 0x35c   : > { %v1282_v6 = vadd.f32 %v1266_v2, %v3159_v13  ;;  %1697 = vst [vmem:[%s3126_s25 + $0x40] sm:$0xff] %v1281_v3 }
 0x35d   : > { %2414 = vpow2.f32 %v1249_v4  ;;  %v1251_v8 = vmul.f32 1.442695, %v1222_v5  ;;  %v1184_v10 = vpop.f32.mrb[44].mxu0  ;;  %2238 = vmatpush3.bf16.msra.mxu1 %v3060_v52 }
 0x35e   : > { %v1185_v51 = vadd.f32 %v1184_v10, %v3072_v58  ;;  %v1186_v7 = vpop.f32.mrb[45].mxu0  ;;  %v1293_v11 = vpack.c.bf16 %v1282_v6, %v1281_v3  ;;  %1698 = vst [vmem:[%s3126_s25 + $0x48] sm:$0xff] %v1282_v6  ;;  %2231 = vmatprep.subr.bf16.mxu1 %v2388_v43 }
 0x35f   : > { %v2411_v12 = vpop.eup %2410  ;;  %2416 = vpow2.f32 %v1251_v8  ;;  %v1187_v14 = vadd.f32 %v1186_v7, %v3074_v59  ;;  %v1188_v13 = vpop.f32.mrb[46].mxu0 }
 0x360   : > { %1685 = vst [vmem:[%s3078_s21 + $0xe0] sm:$0xff] %v1185_v51  ;;  %v1189_v16 = vadd.f32 %v1188_v13, %v3072_v58  ;;  %v1190_v17 = vpop.f32.mrb[47].mxu0  ;;  %2185 = vmatprep.mubr.bf16.mxu1 %v1293_v11  ;;  %v1267_v52 = vmul.f32 %v2411_v12, %v1203_v9 }
 0x361   : > { %v2413_v18 = vpop.eup %2412  ;;  %v1223_v19 = vmul.f32 0.5, %v1187_v14  ;;  %1686 = vst [vmem:[%s3078_s21 + $0xe8] sm:$0xff] %v1187_v14  ;;  %v1191_v20 = vadd.f32 %v1190_v17, %v3074_v59  ;;  %2239 = vmatpush3.bf16.msra.mxu1 %v2388_v43 }
 0x362   : > { %1687 = vst [vmem:[%s3078_s21 + $0xf0] sm:$0xff] %v1189_v16  ;;  %v1268_v21 = vmul.f32 %v2413_v18, %v1204_v15  ;;  %v1283_v23 = vadd.f32 %v1267_v52, %v3174_v29  ;;  %2232 = vmatprep.subr.bf16.mxu1 %v2389_v44 }
 0x363   : > { %v1253_v24 = vmul.f32 1.442695, %v1223_v19  ;;  %v1224_v25 = vmul.f32 0.5, %v1191_v20  ;;  %1688 = vst [vmem:[%s3078_s21 + $0xf8] sm:$0xff] %v1191_v20 }
 0x364   : > { %v1284_v58 = vadd.f32 %v1268_v21, %v3183_v48  ;;  %1699 = vst [vmem:[%s3126_s25 + $0x50] sm:$0xff] %v1283_v23 }
 0x365   : > { %2418 = vpow2.f32 %v1253_v24  ;;  %v1255_v26 = vmul.f32 1.442695, %v1224_v25  ;;  %2240 = vmatpush3.bf16.msra.mxu1 %v2389_v44 }
 0x366   : > { %v1294_v47 = vpack.c.bf16 %v1284_v58, %v1283_v23  ;;  %1700 = vst [vmem:[%s3126_s25 + $0x58] sm:$0xff] %v1284_v58 }
 0x367   : > { %v2415_v59 = vpop.eup %2414  ;;  %2420 = vpow2.f32 %v1255_v26 }
 0x368   : > { %2186 = vmatmul.mubr.bf16.gmra.mrb[24].mxu1 %v1294_v47  ;;  %v1269_v29 = vmul.f32 %v2415_v59, %v1205_v27 }
 0x369   : > { %v2417_v30 = vpop.eup %2416 }
 0x36a   : > { %v1270_v28 = vmul.f32 %v2417_v30, %v1206_v22  ;;  %v1285_v31 = vadd.f32 %v1269_v29, %v3198_v53 }
 0x36c   : > { %v1286_v32 = vadd.f32 %v1270_v28, %v1179_v50  ;;  %1701 = vst [vmem:[%s3126_s25 + $0x60] sm:$0xff] %v1285_v31 }
 0x36e   : > { %v1295_v48 = vpack.c.bf16 %v1286_v32, %v1285_v31  ;;  %1702 = vst [vmem:[%s3126_s25 + $0x68] sm:$0xff] %v1286_v32 }
 0x36f   : > { %v2419_v34 = vpop.eup %2418 }
 0x370   : > { %2189 = vmatprep.mubr.bf16.mxu1 %v1295_v48  ;;  %v1271_v36 = vmul.f32 %v2419_v34, %v1207_v33 }
 0x371   : > { %v2421_v37 = vpop.eup %2420 }
 0x372   : > { %v1272_v38 = vmul.f32 %v2421_v37, %v1208_v35  ;;  %v1287_v39 = vadd.f32 %v1271_v36, %v1185_v51 }
 0x374   : > { %v1288_v40 = vadd.f32 %v1272_v38, %v1189_v16  ;;  %1703 = vst [vmem:[%s3126_s25 + $0x70] sm:$0xff] %v1287_v39 }
 0x376   : > { %v1296_v41 = vpack.c.bf16 %v1288_v40, %v1287_v39  ;;  %1704 = vst [vmem:[%s3126_s25 + $0x78] sm:$0xff] %v1288_v40 }
 0x378   : > { %2190 = vmatmul.mubr.bf16.gmra.mrb[28].mxu1 %v1296_v41 }
 0x41b   : > { %v2179_v46 = vpop.f32.mrb[16].mxu1 }
 0x41c   : > { %v1411_v49 = vadd.f32 %v2179_v46, %v2011_v45  ;;  %v1402_v53 = vpop.f32.mrb[17].mxu1 }
 0x41d   : > { %v1403_v42 = vadd.f32 %v2011_v45, %v1402_v53  ;;  %v2180_v54 = vpop.f32.mrb[18].mxu1 }
 0x41e   : > { %v1414_v55 = vadd.f32 %v2180_v54, %v2011_v45  ;;  %v1405_v56 = vpop.f32.mrb[19].mxu1  ;;  %v1467_v60 = vmax.f32 %v1411_v49, 0.0 }
 0x41f   : > { %v1406_v57 = vadd.f32 %v2011_v45, %v1405_v56  ;;  %v1465_v61 = vmax.f32 %v1403_v42, 0.0 }
 0x420   : > { %v1468_v50 = vmax.f32 %v1414_v55, 0.0 }
 0x421   : > { %v1466_v62 = vmax.f32 %v1406_v57, 0.0 }
 0x422   : > { %v1482_v63 = vpack.c.bf16 %v1468_v50, %v1467_v60 }
 0x423   : > { %v1481_v0 = vpack.c.bf16 %v1466_v62, %v1465_v61 }
 0x425   : > { %2209 = vmatprep.mubr.bf16.mxu0 %v1481_v0 }
 0x426   : > { %2210 = vmatmul.mubr.bf16.vlgmr.msra.gmra.mrb[48].mxu0 %v1482_v63 }
 0x42b   : > { %v2183_v1 = vpop.f32.mrb[20].mxu1 }
 0x42c   : > { %v1427_v2 = vadd.f32 %v2183_v1, %v2011_v45  ;;  %v1418_v3 = vpop.f32.mrb[21].mxu1 }
 0x42d   : > { %v1419_v4 = vadd.f32 %v2011_v45, %v1418_v3  ;;  %v2184_v5 = vpop.f32.mrb[22].mxu1 }
 0x42e   : > { %v1430_v6 = vadd.f32 %v2184_v5, %v2011_v45  ;;  %v1421_v8 = vpop.f32.mrb[23].mxu1  ;;  %v1471_v9 = vmax.f32 %v1427_v2, 0.0 }
 0x42f   : > { %v1422_v10 = vadd.f32 %v2011_v45, %v1421_v8  ;;  %v1469_v7 = vmax.f32 %v1419_v4, 0.0 }
 0x430   : > { %v1472_v51 = vmax.f32 %v1430_v6, 0.0 }
 0x431   : > { %v1470_v11 = vmax.f32 %v1422_v10, 0.0 }
 0x432   : > { %v1484_v12 = vpack.c.bf16 %v1472_v51, %v1471_v9 }
 0x433   : > { %v1483_v14 = vpack.c.bf16 %v1470_v11, %v1469_v7 }
 0x435   : > { %2213 = vmatprep.mubr.bf16.mxu1 %v1483_v14 }
 0x436   : > { %2214 = vmatmul.mubr.bf16.vlgmr.msra.gmra.mrb[32].mxu1 %v1484_v12 }
 0x43b   : > { %v2187_v13 = vpop.f32.mrb[24].mxu1 }
 0x43c   : > { %v1443_v15 = vadd.f32 %v2187_v13, %v2011_v45  ;;  %v1434_v16 = vpop.f32.mrb[25].mxu1 }
 0x43d   : > { %v1435_v17 = vadd.f32 %v2011_v45, %v1434_v16  ;;  %v2188_v52 = vpop.f32.mrb[26].mxu1 }
 0x43e   : > { %v1446_v18 = vadd.f32 %v2188_v52, %v2011_v45  ;;  %v1437_v19 = vpop.f32.mrb[27].mxu1  ;;  %v1475_v21 = vmax.f32 %v1443_v15, 0.0 }
 0x43f   : > { %v1438_v20 = vadd.f32 %v2011_v45, %v1437_v19  ;;  %v1473_v24 = vmax.f32 %v1435_v17, 0.0 }
 0x440   : > { %v1476_v23 = vmax.f32 %v1446_v18, 0.0 }
 0x441   : > { %v1474_v25 = vmax.f32 %v1438_v20, 0.0 }
 0x442   : > { %v1486_v58 = vpack.c.bf16 %v1476_v23, %v1475_v21 }
 0x443   : > { %v1485_v26 = vpack.c.bf16 %v1474_v25, %v1473_v24 }
 0x445   : > { %2217 = vmatprep.mubr.bf16.mxu1 %v1485_v26 }
 0x446   : > { %2218 = vmatmul.mubr.bf16.gmra.mrb[36].mxu1 %v1486_v58 }
 0x44b   : > { %v2191_v27 = vpop.f32.mrb[28].mxu1 }
 0x44c   : > { %v1459_v47 = vadd.f32 %v2191_v27, %v2011_v45  ;;  %v1450_v59 = vpop.f32.mrb[29].mxu1 }
 0x44d   : > { %v1451_v22 = vadd.f32 %v2011_v45, %v1450_v59  ;;  %v2192_v29 = vpop.f32.mrb[30].mxu1 }
 0x44e   : > { %v1462_v30 = vadd.f32 %v2192_v29, %v2011_v45  ;;  %v1453_v28 = vpop.f32.mrb[31].mxu1  ;;  %v1479_v32 = vmax.f32 %v1459_v47, 0.0 }
 0x44f   : > { %v1454_v31 = vadd.f32 %v2011_v45, %v1453_v28  ;;  %v1477_v48 = vmax.f32 %v1451_v22, 0.0 }
 0x450   : > { %v1480_v33 = vmax.f32 %v1462_v30, 0.0 }
 0x451   : > { %v1478_v34 = vmax.f32 %v1454_v31, 0.0 }
 0x452   : > { %v1488_v35 = vpack.c.bf16 %v1480_v33, %v1479_v32 }
 0x453   : > { %v1487_v36 = vpack.c.bf16 %v1478_v34, %v1477_v48 }
 0x455   : > { %2221 = vmatprep.mubr.bf16.mxu1 %v1487_v36 }
 0x456   : > { %2222 = vmatmul.mubr.bf16.gmra.mrb[40].mxu1 %v1488_v35 }
 0x457   : > { %2547 = shalt.err (!%p2544_p0)
}
 0x458   : > { %s2548_s25 = scalar_lea.hbm %s3251_s29, 2048  ;;  %s2552_s24 = scalar_lea.hbm %s3446_s20, 4096 }
 0x459   : > { %p2549_p10 = scmp.ne.s32.totalorder %s3251_s29, %s2548_s25  ;;  %p2553_p4 = scmp.lt.u32.totalorder %s3251_s29, %s3446_s20 }
 0x45a   : > { %p2554_p12 = scmp.lt.u32.totalorder %s2552_s24, %s2548_s25  ;;  %p2556_p8 = scmp.lt.u32.totalorder %s2548_s25, %s3251_s29 }
 0x45b   : > { %p2550_p2 = pnand %p2549_p10, %p3447_p11 }
 0x45c   : > { %p2555_p7 = por %p2554_p12, %p2553_p4 }
 0x45d   : > { %p2551_p3 = pneg %p2550_p2 }
 0x45e   : > { %p2557_p13 = por %p2556_p8, %p2555_p7 }
 0x460   : > { %p2558_p1 = pnand %p2557_p13, %p2551_p3 }
 0x462   : > { %2561 = shalt.err (!%p2558_p1)
}
 0x463   : > { %s2678_s11 = smov 128   ;;  %s2679_s15 = smov 8  }
 0x464   : > { %2258 = dma.vmem_to_hbm [thread:$0]  (%p3447_p11), %s3254_s27, 2048, %s3251_s29, %s3256_s22, %s2678_s11, %s2678_s11, %s2679_s15  }
 0x465   : > { %s2042_s19 = sshll.u32 %s2780_s17, 12  ;;  %s3448_s13 = sld [smem:[#allocation26_spill]] }
 0x466   : > { %s1746_s26 = sshll.u32 %s3078_s21, 4  ;;  %s1722_s28 = scalar_lea.sflag [#allocation4], %s3066_s18  ;;  %s3290_s26 = int_to_ptr.vmem [resolvable:$true] %s1746_s26 }
 0x467   : > { %s2562_s14 = scalar_lea.vmem %s3290_s26, 4096  ;;  %s2680_s16 = smov [#allocation10]  }
 0x468   : > { %p2563_p6 = scmp.ne.s32.totalorder %s3290_s26, %s2562_s14  ;;  %s2566_s29 = sshll.u32 %s2680_s16, 4  ;;  %s2567_s29 = int_to_ptr.vmem [resolvable:$false] %s2566_s29 }
 0x469   : > { %s2568_s27 = scalar_lea.vmem %s2567_s29, 8192  ;;  %p2569_p0 = scmp.lt.s32.totalorder %s3290_s26, %s2567_s29 }
 0x46a   : > { %p2564_p9 = pnand %p2563_p6, %p3447_p11  ;;  %p2570_p10 = scmp.lt.s32.totalorder %s2568_s27, %s2562_s14 }
 0x46b   : > { %s3287_s24 = scalar_lea.hbm %s3448_s13, %s2042_s19 }
 0x46c   : > { %p2565_p5 = pneg %p2564_p9  ;;  %p2571_p2 = por %p2570_p10, %p2569_p0 }
 0x46e   : > { %p2572_p3 = pnand %p2571_p2, %p2565_p5 }
 0x470   : > { %2575 = shalt.err (!%p2572_p3)
}
 0x471   : > { %s2576_s21 = scalar_lea.hbm %s3287_s24, 4096  ;;  %s2580_s16 = scalar_lea.hbm %s3448_s13, 8192 }
 0x472   : > { %p2577_p4 = scmp.ne.s32.totalorder %s3287_s24, %s2576_s21  ;;  %p2581_p8 = scmp.lt.u32.totalorder %s3287_s24, %s3448_s13 }
 0x473   : > { %p2582_p13 = scmp.lt.u32.totalorder %s2580_s16, %s2576_s21  ;;  %p2584_p6 = scmp.lt.u32.totalorder %s2576_s21, %s3287_s24 }
 0x474   : > { %p2578_p12 = pnand %p2577_p4, %p3447_p11 }
 0x475   : > { %p2583_p1 = por %p2582_p13, %p2581_p8 }
 0x476   : > { %p2579_p7 = pneg %p2578_p12 }
 0x477   : > { %p2585_p9 = por %p2584_p6, %p2583_p1 }
 0x479   : > { %p2586_p5 = pnand %p2585_p9, %p2579_p7 }
 0x47b   : > { %2589 = shalt.err (!%p2586_p5)
}
 0x47c   : > { %s2681_s14 = smov 256   ;;  %s2682_s27 = smov 16  }
 0x47d   : > { %2257 = dma.vmem_to_hbm [thread:$0]  (%p3447_p11), %s3290_s26, 4096, %s3287_s24, %s1722_s28, %s2681_s14, %s2681_s14, %s2682_s27  }
 0x47e   : > { %s3449_s12 = sld [smem:[#allocation25_spill]]  ;;  %s3450_s21 = sshll.u32 %s3066_s18, 7 }
 0x47f   : > { %s3321_s16 = scalar_lea.vmem [#allocation13], %s3450_s21  ;;  %s3451_s24 = sshll.u32 %s2780_s17, 11 }
 0x480   : > { %s1778_s18 = sshll.u32 %s3321_s16, 4  ;;  %s3452_s29 = sld [smem:[#allocation28_spill]]  ;;  %s3345_s18 = int_to_ptr.vmem [resolvable:$true] %s1778_s18 }
 0x481   : > { %s2590_s19 = scalar_lea.vmem %s3345_s18, 2048  ;;  %s2683_s25 = smov [#allocation13]  }
 0x482   : > { %p2591_p0 = scmp.ne.s32.totalorder %s3345_s18, %s2590_s19 }
 0x484   : > { %v2020_v37 = vld [vmem:[%s3449_s12] ss:$0 sm:$0xff]  ;;  %p2592_p10 = pnand %p2591_p0, %p3447_p11  ;;  %s2594_s12 = sshll.u32 %s2683_s25, 4  ;;  %s2595_s12 = int_to_ptr.vmem [resolvable:$false] %s2594_s12 }
 0x485   : > { %s2596_s17 = scalar_lea.vmem %s2595_s12, 4096  ;;  %p2597_p3 = scmp.lt.s32.totalorder %s3345_s18, %s2595_s12 }
 0x486   : > { %s3453_s14 = smov %s3452_s29  ;;  %s3343_s27 = scalar_lea.hbm %s3452_s29, %s3451_s24 }
 0x487   : > { %p2593_p2 = pneg %p2592_p10  ;;  %p2598_p4 = scmp.lt.s32.totalorder %s2596_s17, %s2590_s19 }
 0x489   : > { %p2599_p12 = por %p2598_p4, %p2597_p3 }
 0x48b   : > { %p2600_p7 = pnand %p2599_p12, %p2593_p2 }
 0x4f9   : > { %v2211_v38 = vpop.f32.mrb[48].mxu0 }
 0x4fa   : > { %v1603_v39 = vadd.f32 %v2211_v38, %v2020_v37  ;;  %v1594_v40 = vpop.f32.mrb[49].mxu0 }
 0x4fb   : > { %v1595_v41 = vadd.f32 %v2020_v37, %v1594_v40  ;;  %v2212_v43 = vpop.f32.mrb[50].mxu0 }
 0x4fc   : > { %1707 = vst [vmem:[%s3321_s16 + $0x10] sm:$0xff] %v1603_v39  ;;  %v1606_v44 = vadd.f32 %v2212_v43, %v2020_v37  ;;  %v1597_v45 = vpop.f32.mrb[51].mxu0 }
 0x4fd   : > { %1705 = vst [vmem:[%s3321_s16] sm:$0xff] %v1595_v41  ;;  %v1598_v46 = vadd.f32 %v2020_v37, %v1597_v45 }
 0x4fe   : > { %1708 = vst [vmem:[%s3321_s16 + $0x18] sm:$0xff] %v1606_v44 }
 0x4ff   : > { %1706 = vst [vmem:[%s3321_s16 + $0x8] sm:$0xff] %v1598_v46 }
 0x509   : > { %v2215_v49 = vpop.f32.mrb[32].mxu1 }
 0x50a   : > { %v1619_v53 = vadd.f32 %v2215_v49, %v2020_v37  ;;  %v1610_v42 = vpop.f32.mrb[33].mxu1 }
 0x50b   : > { %v1611_v54 = vadd.f32 %v2020_v37, %v1610_v42  ;;  %v2216_v55 = vpop.f32.mrb[34].mxu1 }
 0x50c   : > { %1711 = vst [vmem:[%s3321_s16 + $0x30] sm:$0xff] %v1619_v53  ;;  %v1622_v56 = vadd.f32 %v2216_v55, %v2020_v37  ;;  %v1613_v57 = vpop.f32.mrb[35].mxu1 }
 0x50d   : > { %1709 = vst [vmem:[%s3321_s16 + $0x20] sm:$0xff] %v1611_v54  ;;  %v1614_v60 = vadd.f32 %v2020_v37, %v1613_v57 }
 0x50e   : > { %1712 = vst [vmem:[%s3321_s16 + $0x38] sm:$0xff] %v1622_v56 }
 0x50f   : > { %1710 = vst [vmem:[%s3321_s16 + $0x28] sm:$0xff] %v1614_v60 }
 0x519   : > { %v2219_v50 = vpop.f32.mrb[36].mxu1 }
 0x51a   : > { %v1635_v61 = vadd.f32 %v2219_v50, %v2020_v37  ;;  %v1626_v62 = vpop.f32.mrb[37].mxu1 }
 0x51b   : > { %v1627_v63 = vadd.f32 %v2020_v37, %v1626_v62  ;;  %v2220_v0 = vpop.f32.mrb[38].mxu1 }
 0x51c   : > { %1715 = vst [vmem:[%s3321_s16 + $0x50] sm:$0xff] %v1635_v61  ;;  %v1638_v1 = vadd.f32 %v2220_v0, %v2020_v37  ;;  %v1629_v2 = vpop.f32.mrb[39].mxu1 }
 0x51d   : > { %1713 = vst [vmem:[%s3321_s16 + $0x40] sm:$0xff] %v1627_v63  ;;  %v1630_v3 = vadd.f32 %v2020_v37, %v1629_v2 }
 0x51e   : > { %1716 = vst [vmem:[%s3321_s16 + $0x58] sm:$0xff] %v1638_v1 }
 0x51f   : > { %1714 = vst [vmem:[%s3321_s16 + $0x48] sm:$0xff] %v1630_v3 }
 0x529   : > { %v2223_v4 = vpop.f32.mrb[40].mxu1 }
 0x52a   : > { %v1651_v5 = vadd.f32 %v2223_v4, %v2020_v37  ;;  %v1642_v6 = vpop.f32.mrb[41].mxu1 }
 0x52b   : > { %v1643_v8 = vadd.f32 %v2020_v37, %v1642_v6  ;;  %v2224_v10 = vpop.f32.mrb[42].mxu1 }
 0x52c   : > { %1719 = vst [vmem:[%s3321_s16 + $0x70] sm:$0xff] %v1651_v5  ;;  %v1654_v9 = vadd.f32 %v2224_v10, %v2020_v37  ;;  %v1645_v51 = vpop.f32.mrb[43].mxu1 }
 0x52d   : > { %1717 = vst [vmem:[%s3321_s16 + $0x60] sm:$0xff] %v1643_v8  ;;  %v1646_v7 = vadd.f32 %v2020_v37, %v1645_v51 }
 0x52e   : > { %1720 = vst [vmem:[%s3321_s16 + $0x78] sm:$0xff] %v1654_v9 }
 0x52f   : > { %1718 = vst [vmem:[%s3321_s16 + $0x68] sm:$0xff] %v1646_v7 }
 0x530   : > { %2603 = shalt.err (!%p2600_p7)
}
 0x531   : > { %s2604_s21 = scalar_lea.hbm %s3343_s27, 2048  ;;  %s2608_s26 = scalar_lea.hbm %s3453_s14, 4096 }
 0x532   : > { %p2605_p8 = scmp.ne.s32.totalorder %s3343_s27, %s2604_s21  ;;  %p2609_p6 = scmp.lt.u32.totalorder %s3343_s27, %s3453_s14 }
 0x533   : > { %p2610_p9 = scmp.lt.u32.totalorder %s2608_s26, %s2604_s21  ;;  %p2612_p0 = scmp.lt.u32.totalorder %s2604_s21, %s3343_s27 }
 0x534   : > { %p2606_p13 = pnand %p2605_p8, %p3447_p11 }
 0x535   : > { %p2611_p5 = por %p2610_p9, %p2609_p6 }
 0x536   : > { %p2607_p1 = pneg %p2606_p13 }
 0x537   : > { %p2613_p10 = por %p2612_p0, %p2611_p5 }
 0x539   : > { %p2614_p2 = pnand %p2613_p10, %p2607_p1 }
 0x53b   : > { %2617 = shalt.err (!%p2614_p2)
}
 0x53c   : > { %2259 = dma.vmem_to_hbm [thread:$0]  (%p3447_p11), %s3345_s18, 2048, %s3343_s27, %s3256_s22, %s2678_s11, %s2678_s11, %s2679_s15  }
 0x53d PF: > { %s3454_s19 = sld [smem:[#allocation21_spill]]  ;;  %s3455_s25 = sld [smem:[#allocation19_spill]] }
 0x53e   : > { %s3456_s12 = sld [smem:[#allocation24_spill]] }
 0x543   : > { %p2294_p3 = scmp.ge.s32.totalorder %s3454_s19, 2  ;;  %s1793_s17 = sand.u32 1, %s3455_s25  }
 0x544   : > { %p3457_p4 = scmp.ne.s32.totalorder %s3456_s12, 0  ;;  %s1794_s21 = scalar_lea.sflag [#allocation4], %s1793_s17 }
 0x546   : > { %p2277_p12 = pnand %p2294_p3, %p3457_p4 }
 0x548   : > { %2647 = dma.done.wait (!%p2277_p12), %s1794_s21, 4096  }
 0x549   : > { %2649 = vsyncadd (!%p2277_p12), %s1794_s21, 4294963200  ;;  %s3458_s23 = sadd.s32 4294967294, %s3454_s19  }
 0x54a   : > { %s1802_s16 = sand.u32 1, %s3458_s23  }
 0x54b   : > { %s1803_s24 = scalar_lea.sflag [#allocation12], %s1802_s16 }
 0x54c   : > { %2651 = dma.done.wait (!%p2277_p12), %s1803_s24, 4096  }
 0x54d   : > { %2653 = vsyncadd (!%p2277_p12), %s1803_s24, 4294963200  ;;  %s3459_s16 = sld [smem:[#allocation22_spill]]  ;;  %s3460_s22 = sld [smem:[#allocation20_spill]] }
 0x54e   : > { %s3461_s15 = sld [smem:[#allocation23_spill]]  ;;  %s3462_s29 = smov %s2660_s30 }
 0x553   : > { %p31_p11 = scmp.ge.s32.totalorder %s3459_s16, 4   ;;  %s3463_s30 = smov %s3460_s22 }
 0x555   :  { %33 = sbr.rel (!%p31_p11) target bundleno = 13 (0xd), region = 155 }
 0x55c   :  { %1817 = vsyncpa [#allocation3], 1 }
 0x55d   :  { %1819 = vsyncpa [#allocation3 + $0x1], 1 }
 0x55e   :  { %1820 = vsyncpa [#allocation6], 1 }
 0x55f   :  { %1821 = vsyncpa [#allocation9], 1 }
 0x560   :  { %1822 = vsyncpa [#allocation4], 1 }
 0x561   :  { %1824 = vsyncpa [#allocation4 + $0x1], 1 }
 0x562   :  { %1825 = vsyncpa [#allocation12], 1 }
 0x563   :  { %1827 = vsyncpa [#allocation12 + $0x1], 1 }

</bundles_post_ra>
